<compile_context>
chip_gen: v6e
topology: v6e:2x2x1
jax: 0.10.0
libtpu: 0.0.40
codegen_flags: <defaults>
</compile_context>

<pallas_src>
import functools
import math

import jax
import jax.numpy as jnp
from jax.experimental import pallas as pl
from jax.experimental.pallas import tpu as pltpu

_LN_EPS = 1e-5                      # PyTorch nn.LayerNorm default
_LN_BLOCK_BYTES = 1 << 20           # ~1 MiB LN blocks: near HBM roofline, safe on v5e
_BLOCK_VMEM_LIMIT = 64 * 1024 * 1024  # explicit scoped-VMEM budget for resident bf16 weights


# ---------------------------------------------------------------------------
# Parameter / table construction (plain JAX, mirrors the PyTorch module).
# ---------------------------------------------------------------------------
def build_pe_table(num_hiddens: int, max_len: int = 1000) -> jnp.ndarray:
    """Sinusoidal positional-encoding table, shape (1, max_len, H) float32."""
    assert num_hiddens % 2 == 0
    position = jnp.arange(0, max_len, dtype=jnp.float32).reshape(-1, 1)
    div_term = jnp.exp(jnp.arange(0, num_hiddens, 2, dtype=jnp.float32)
                       * (-math.log(10000.0) / num_hiddens))
    angles = position * div_term
    P = jnp.zeros((max_len, num_hiddens), dtype=jnp.float32)
    P = P.at[:, 0::2].set(jnp.sin(angles))
    P = P.at[:, 1::2].set(jnp.cos(angles))
    return P[None]


def init_params(key, d_model: int, n_blocks: int):
    # TODO(synk): ptu.m_init's exact init scheme is not in the spec; deterministic
    # scaled-normal init is used (forward semantics unchanged).
    def linear_init(k, din, dout):
        kw, kb = jax.random.split(k)
        w = jax.random.normal(kw, (din, dout), jnp.float32) / math.sqrt(din)
        b = 0.05 * jax.random.normal(kb, (dout,), jnp.float32)
        return w, b

    def ln_init(k, d):
        kg, kb = jax.random.split(k)
        return (1.0 + 0.1 * jax.random.normal(kg, (d,), jnp.float32),
                0.1 * jax.random.normal(kb, (d,), jnp.float32))

    keys = jax.random.split(key, n_blocks + 1)
    ln_g, ln_b = ln_init(keys[0], d_model)
    blocks = []
    for i in range(n_blocks):
        k = jax.random.split(keys[i + 1], 8)
        wq, bq = linear_init(k[0], d_model, d_model)
        wk, bk = linear_init(k[1], d_model, d_model)
        wv, bv = linear_init(k[2], d_model, d_model)
        wo, bo = linear_init(k[3], d_model, d_model)
        w1, b1 = linear_init(k[4], d_model, d_model)     # Mlp hidden layer (gelu)
        w2, b2 = linear_init(k[5], d_model, d_model)     # Mlp output layer
        ln1_g, ln1_b = ln_init(k[6], d_model)
        ln2_g, ln2_b = ln_init(k[7], d_model)
        blocks.append(dict(wq=wq, bq=bq, wk=wk, bk=bk, wv=wv, bv=bv, wo=wo, bo=bo,
                           w1=w1, b1=b1, w2=w2, b2=b2,
                           ln1_g=ln1_g, ln1_b=ln1_b, ln2_g=ln2_g, ln2_b=ln2_b))
    return dict(ln_g=ln_g, ln_b=ln_b, blocks=blocks)


def pack_params(params, n_heads: int):
    """One-time repack into the kernel layout: bf16 weights, per-head slices
    (wk stored pre-transposed so the score matmul is (S,hd)@(hd,S) with no
    per-head transpose), wo in per-head row blocks for head-merge-free accumulation."""
    H = params["ln_g"].shape[0]
    hd = H // n_heads
    bf = lambda w: w.astype(jnp.bfloat16)
    blocks = []
    for blk in params["blocks"]:
        blocks.append(dict(
            wq=bf(blk["wq"].reshape(H, n_heads, hd).transpose(1, 0, 2)),   # (nh, H, hd)
            bq=blk["bq"].reshape(n_heads, 1, hd),
            wkt=bf(blk["wk"].reshape(H, n_heads, hd).transpose(1, 2, 0)),  # (nh, hd, H) = Wk_h^T
            bkt=blk["bk"].reshape(n_heads, hd, 1),
            wv=bf(blk["wv"].reshape(H, n_heads, hd).transpose(1, 0, 2)),   # (nh, H, hd)
            bv=blk["bv"].reshape(n_heads, 1, hd),
            wo=bf(blk["wo"].reshape(n_heads, hd, H)),                      # (nh, hd, H)
            bo=blk["bo"].reshape(1, H),
            ln1_g=blk["ln1_g"].reshape(1, H), ln1_b=blk["ln1_b"].reshape(1, H),
            w1=bf(blk["w1"]), b1=blk["b1"].reshape(1, H),
            w2=bf(blk["w2"]), b2=blk["b2"].reshape(1, H),
            ln2_g=blk["ln2_g"].reshape(1, H), ln2_b=blk["ln2_b"].reshape(1, H)))
    return dict(ln_g=params["ln_g"], ln_b=params["ln_b"], blocks=blocks)


# ---------------------------------------------------------------------------
# Kernel bodies
# ---------------------------------------------------------------------------
def _ln(z, g, b):
    m = jnp.mean(z, axis=-1, keepdims=True)
    zc = z - m
    var = jnp.mean(zc * zc, axis=-1, keepdims=True)
    return zc * jax.lax.rsqrt(var + _LN_EPS) * g + b


def _pe_ln_kernel(x_ref, p_ref, g_ref, b_ref, o_ref):
    """o = LayerNorm(x + P) ; x block (tB, S, H), P block (1, S, H) broadcast."""
    z = x_ref[...].astype(jnp.float32) + p_ref[...].astype(jnp.float32)
    o_ref[...] = _ln(z, g_ref[...].astype(jnp.float32),
                     b_ref[...].astype(jnp.float32)).astype(o_ref.dtype)


def _ln_kernel(x_ref, g_ref, b_ref, o_ref):
    """Pure LayerNorm (agent path: no positional table, no zero tensor)."""
    z = x_ref[...].astype(jnp.float32)
    o_ref[...] = _ln(z, g_ref[...].astype(jnp.float32),
                     b_ref[...].astype(jnp.float32)).astype(o_ref.dtype)


def _encode_block_kernel(x_ref,
                         wq_ref, bq_ref, wkt_ref, bkt_ref, wv_ref, bv_ref,
                         wo_ref, bo_ref, ln1_g_ref, ln1_b_ref,
                         w1_ref, b1_ref, w2_ref, b2_ref, ln2_g_ref, ln2_b_ref,
                         o_ref, *, n_heads, scale):
    """Whole EncodeBlock for one sequence tile (1, S, H), entirely in VMEM:
       ln2( h1 + ffn(h1) ),  h1 = ln1( x + Wo @ attn_heads(x) )."""
    f32, bf16 = jnp.float32, jnp.bfloat16
    x = x_ref[0].astype(f32)                       # (S, H) residual kept in f32
    xb = x.astype(bf16)                            # bf16 MXU operand
    xtb = x.T.astype(bf16)                         # (H, S): single transpose -> K^T source

    attn = bo_ref[...].astype(f32)                 # (1, H); broadcasts on first accumulate
    for h in range(n_heads):                       # n_heads is small & static (unrolled)
        q = jnp.dot(xb, wq_ref[h], preferred_element_type=f32) + bq_ref[h]      # (S, hd)
        kt = jnp.dot(wkt_ref[h], xtb, preferred_element_type=f32) + bkt_ref[h]  # (hd, S)
        v = jnp.dot(xb, wv_ref[h], preferred_element_type=f32) + bv_ref[h]      # (S, hd)
        s = jnp.dot(q.astype(bf16), kt.astype(bf16),
                    preferred_element_type=f32) * scale                          # (S, S)
        s = s - jnp.max(s, axis=-1, keepdims=True)
        p = jnp.exp(s)
        p = p * pl.reciprocal(jnp.sum(p, axis=-1, keepdims=True), approx=True)
        o_h = jnp.dot(p.astype(bf16), v.astype(bf16), preferred_element_type=f32)  # (S, hd)
        # head-merge-free output projection: sum_h o_h @ Wo[h*hd:(h+1)*hd, :]
        attn = attn + jnp.dot(o_h.astype(bf16), wo_ref[h], preferred_element_type=f32)

    h1 = _ln(x + attn, ln1_g_ref[...].astype(f32), ln1_b_ref[...].astype(f32))  # ln1(x+attn)

    # Fused Mlp: gelu(h1 @ w1 + b1) @ w2 + b2 — intermediate never leaves VMEM.
    # TODO(synk): F.gelu defaults to the exact erf form; tanh approximation is used
    #             here (the pure-JAX reference below uses the same form).
    ff = jnp.dot(h1.astype(bf16), w1_ref[...], preferred_element_type=f32) \
        + b1_ref[...].astype(f32)
    ff = jax.nn.gelu(ff, approximate=True)
    ff = jnp.dot(ff.astype(bf16), w2_ref[...], preferred_element_type=f32) \
        + b2_ref[...].astype(f32)

    out = _ln(h1 + ff, ln2_g_ref[...].astype(f32), ln2_b_ref[...].astype(f32))  # ln2(h1+ffn)
    o_ref[0] = out.astype(o_ref.dtype)


# ---------------------------------------------------------------------------
# pallas_call wrappers
# ---------------------------------------------------------------------------
def _batch_tile(batch, seq, hidden, itemsize=4, target_bytes=_LN_BLOCK_BYTES):
    """Largest divisor of `batch` whose (tB, S, H) f32 block is ~<= target_bytes."""
    per_seq = max(1, seq * hidden * itemsize)
    t = max(1, min(batch, target_bytes // per_seq))
    while batch % t:
        t -= 1
    return t


def pe_layernorm(x, pe, gamma, beta):
    """LayerNorm(x + pe) over the last axis; pe (1, S, H) broadcast over batch.
    One grid axis over MiB-scale batch tiles (lane-dense, bandwidth-bound)."""
    B, S, H = x.shape
    tB = _batch_tile(B, S, H)
    return pl.pallas_call(
        _pe_ln_kernel,
        out_shape=jax.ShapeDtypeStruct((B, S, H), x.dtype),
        grid_spec=pltpu.PrefetchScalarGridSpec(
            num_scalar_prefetch=0,
            grid=(B // tB,),
            in_specs=[
                pl.BlockSpec((tB, S, H), lambda i: (i, 0, 0)),
                pl.BlockSpec((1, S, H), lambda i: (0, 0, 0)),
                pl.BlockSpec((1, 1, H), lambda i: (0, 0, 0)),
                pl.BlockSpec((1, 1, H), lambda i: (0, 0, 0)),
            ],
            out_specs=pl.BlockSpec((tB, S, H), lambda i: (i, 0, 0)),
        ),
        compiler_params=pltpu.CompilerParams(dimension_semantics=("parallel",)),
    )(x, pe, gamma.reshape(1, 1, H), beta.reshape(1, 1, H))


def layernorm(x, gamma, beta):
    """Pure LayerNorm for the agent path (no positional table, no zeros operand)."""
    B, S, H = x.shape
    tB = _batch_tile(B, S, H)
    return pl.pallas_call(
        _ln_kernel,
        out_shape=jax.ShapeDtypeStruct((B, S, H), x.dtype),
        grid_spec=pltpu.PrefetchScalarGridSpec(
            num_scalar_prefetch=0,
            grid=(B // tB,),
            in_specs=[
                pl.BlockSpec((tB, S, H), lambda i: (i, 0, 0)),
                pl.BlockSpec((1, 1, H), lambda i: (0, 0, 0)),
                pl.BlockSpec((1, 1, H), lambda i: (0, 0, 0)),
            ],
            out_specs=pl.BlockSpec((tB, S, H), lambda i: (i, 0, 0)),
        ),
        compiler_params=pltpu.CompilerParams(dimension_semantics=("parallel",)),
    )(x, gamma.reshape(1, 1, H), beta.reshape(1, 1, H))


def encode_block(x, blk, n_heads):
    """One fused EncodeBlock pallas_call, gridded over sequences; bf16 weights stay
    VMEM-resident (constant index maps); x is donated (input_output_aliases)."""
    B, S, H = x.shape
    hd = H // n_heads
    c3 = lambda i: (0, 0, 0)
    c2 = lambda i: (0, 0)
    kernel = functools.partial(_encode_block_kernel, n_heads=n_heads,
                               scale=1.0 / math.sqrt(hd))
    # TODO(synk): for very large d_model, N-tile w1/w2/wq/wv instead of full residency.
    return pl.pallas_call(
        kernel,
        out_shape=jax.ShapeDtypeStruct((B, S, H), x.dtype),
        grid_spec=pltpu.PrefetchScalarGridSpec(
            num_scalar_prefetch=0,
            grid=(B,),
            in_specs=[
                pl.BlockSpec((1, S, H), lambda i: (i, 0, 0)),      # x
                pl.BlockSpec((n_heads, H, hd), c3),                # wq (per head)
                pl.BlockSpec((n_heads, 1, hd), c3),                # bq
                pl.BlockSpec((n_heads, hd, H), c3),                # wk^T (per head)
                pl.BlockSpec((n_heads, hd, 1), c3),                # bk^T
                pl.BlockSpec((n_heads, H, hd), c3),                # wv (per head)
                pl.BlockSpec((n_heads, 1, hd), c3),                # bv
                pl.BlockSpec((n_heads, hd, H), c3),                # wo (per-head row blocks)
                pl.BlockSpec((1, H), c2),                          # bo
                pl.BlockSpec((1, H), c2),                          # ln1 gamma
                pl.BlockSpec((1, H), c2),                          # ln1 beta
                pl.BlockSpec((H, H), c2),                          # w1
                pl.BlockSpec((1, H), c2),                          # b1
                pl.BlockSpec((H, H), c2),                          # w2
                pl.BlockSpec((1, H), c2),                          # b2
                pl.BlockSpec((1, H), c2),                          # ln2 gamma
                pl.BlockSpec((1, H), c2),                          # ln2 beta
            ],
            out_specs=pl.BlockSpec((1, S, H), lambda i: (i, 0, 0)),
        ),
        compiler_params=pltpu.CompilerParams(
            dimension_semantics=("parallel",),
            vmem_limit_bytes=_BLOCK_VMEM_LIMIT),
        input_output_aliases={0: 0},
    )(x, blk["wq"], blk["bq"], blk["wkt"], blk["bkt"], blk["wv"], blk["bv"],
      blk["wo"], blk["bo"], blk["ln1_g"], blk["ln1_b"],
      blk["w1"], blk["b1"], blk["w2"], blk["b2"], blk["ln2_g"], blk["ln2_b"])


def trans_encoder_forward(x, P, packed, n_heads, is_agent):
    """Pallas implementation of TransEncoder.forward (both is_agent paths)."""
    if not is_agent:
        mb, bs, S, H = x.shape
        h = x.reshape(mb * bs, S, H)
        h = pe_layernorm(h, P[:, :S, :], packed["ln_g"], packed["ln_b"])   # ln(pe(x))
    else:
        h = layernorm(x, packed["ln_g"], packed["ln_b"])                   # ln(x)
    for blk in packed["blocks"]:
        h = encode_block(h, blk, n_heads)                                  # fused EncodeBlock
    out = h[:, 0]                                                          # [:, 0]
    if not is_agent:
        out = out.reshape(mb, bs, x.shape[-1])
    return out


# ---------------------------------------------------------------------------
# Pure-JAX reference (mirrors the PyTorch forward op-for-op, with the same
# bf16-operand / f32-accumulate matmul discipline as the kernels).
# ---------------------------------------------------------------------------
def _mm(a, b):
    return jnp.dot(a.astype(jnp.bfloat16), b.astype(jnp.bfloat16),
                   preferred_element_type=jnp.float32)


def _layer_norm_ref(x, g, b):
    m = jnp.mean(x, axis=-1, keepdims=True)
    v = jnp.mean((x - m) ** 2, axis=-1, keepdims=True)
    return (x - m) * jax.lax.rsqrt(v + _LN_EPS) * g + b


def _attention_ref(x, blk, n_heads):
    B, S, H = x.shape
    hd = H // n_heads
    q = _mm(x, blk["wq"]) + blk["bq"]
    k = _mm(x, blk["wk"]) + blk["bk"]
    v = _mm(x, blk["wv"]) + blk["bv"]
    heads = lambda t: t.reshape(B, S, n_heads, hd).transpose(0, 2, 1, 3)
    q, k, v = heads(q), heads(k), heads(v)
    s = jnp.einsum("bhqd,bhkd->bhqk", q.astype(jnp.bfloat16), k.astype(jnp.bfloat16),
                   preferred_element_type=jnp.float32) / math.sqrt(hd)
    a = jax.nn.softmax(s, axis=-1)
    o = jnp.einsum("bhqk,bhkd->bhqd", a.astype(jnp.bfloat16), v.astype(jnp.bfloat16),
                   preferred_element_type=jnp.float32)
    o = o.transpose(0, 2, 1, 3).reshape(B, S, H)
    return _mm(o, blk["wo"]) + blk["bo"]


def trans_encoder_ref(x, P, params, n_heads, is_agent):
    if not is_agent:
        mb, bs, na, d = x.shape
        h = x.reshape(mb * bs, na, d) + P[:, :na, :]
    else:
        h = x
    h = _layer_norm_ref(h, params["ln_g"], params["ln_b"])
    for blk in params["blocks"]:
        h = _layer_norm_ref(h + _attention_ref(h, blk, n_heads), blk["ln1_g"], blk["ln1_b"])
        f = _mm(jax.nn.gelu(_mm(h, blk["w1"]) + blk["b1"], approximate=True),
                blk["w2"]) + blk["b2"]
        h = _layer_norm_ref(h + f, blk["ln2_g"], blk["ln2_b"])
    out = h[:, 0]
    if not is_agent:
        out = out.reshape(mb, bs, x.shape[-1])
    return out


# ---------------------------------------------------------------------------
# Demo / self-check
# ---------------------------------------------------------------------------
if __name__ == "__main__":
    meta_batch, batch_size, n_agents, d_model = 2, 2, 8, 32
    n_heads, n_blocks = 4, 2

    key = jax.random.PRNGKey(0)
    k_x4, k_x3, k_p = jax.random.split(key, 3)
    x_meta = jax.random.normal(k_x4, (meta_batch, batch_size, n_agents, d_model), jnp.float32)
    x_agent = jax.random.normal(k_x3, (batch_size, n_agents, d_model), jnp.float32)

    P = build_pe_table(d_model, max_len=1000)
    params = init_params(k_p, d_model, n_blocks)
    packed = pack_params(params, n_heads)

    fwd = jax.jit(trans_encoder_forward, static_argnames=("n_heads", "is_agent"))

    # Tolerances account for the intentional bf16 MXU operands and the EUP
    # approximate reciprocal in the softmax (accumulation is f32).
    atol = rtol = 2e-2

    # Non-agent path: PositionalEncoding + LayerNorm + blocks + [:, 0] + reshape.
    out_meta = jax.block_until_ready(fwd(x_meta, P, packed, n_heads=n_heads, is_agent=False))
    ref_meta = trans_encoder_ref(x_meta, P, params, n_heads, is_agent=False)
    assert out_meta.shape == (meta_batch, batch_size, d_model)
    err_meta = float(jnp.max(jnp.abs(out_meta - ref_meta)))
    assert jnp.allclose(out_meta, ref_meta, atol=atol, rtol=rtol), (
        f"non-agent path mismatch: max abs err {err_meta}")

    # Agent path: LayerNorm + blocks + [:, 0].
    out_agent = jax.block_until_ready(fwd(x_agent, P, packed, n_heads=n_heads, is_agent=True))
    ref_agent = trans_encoder_ref(x_agent, P, params, n_heads, is_agent=True)
    assert out_agent.shape == (batch_size, d_model)
    err_agent = float(jnp.max(jnp.abs(out_agent - ref_agent)))
    assert jnp.allclose(out_agent, ref_agent, atol=atol, rtol=rtol), (
        f"agent path mismatch: max abs err {err_agent}")

    print("KERNEL_OK")
</pallas_src>

<mosaic_0001>
module attributes {stable_mosaic.version = 11 : i64} {
  func.func @_pe_ln_kernel(%arg0: i32, %arg1: memref<4x8x32xf32, #tpu.memory_space<vmem>>, %arg2: memref<1x8x32xf32, #tpu.memory_space<vmem>>, %arg3: memref<1x1x32xf32, #tpu.memory_space<vmem>>, %arg4: memref<1x1x32xf32, #tpu.memory_space<vmem>>, %arg5: memref<4x8x32xf32, #tpu.memory_space<vmem>>) attributes {dimension_semantics = [#tpu.dimension_semantics<parallel>], iteration_bounds = array<i64: 1>, scalar_prefetch = 0 : i64, scratch_operands = 0 : i64, tpu.core_type = #tpu.core_type<tc>, window_params = [{transform_indices = @transform_0, window_bounds = array<i64: 4, 8, 32>}, {pipeline_mode = #tpu.pipeline_mode<synchronous>, transform_indices = @transform_1, window_bounds = array<i64: 1, 8, 32>}, {pipeline_mode = #tpu.pipeline_mode<synchronous>, transform_indices = @transform_2, window_bounds = array<i64: 1, 1, 32>}, {pipeline_mode = #tpu.pipeline_mode<synchronous>, transform_indices = @transform_3, window_bounds = array<i64: 1, 1, 32>}, {transform_indices = @transform_4, window_bounds = array<i64: 4, 8, 32>}]} {
    %c0 = arith.constant 0 : index
    %c0_0 = arith.constant 0 : index
    %c0_1 = arith.constant 0 : index
    %0 = vector.load %arg1[%c0, %c0_0, %c0_1] : memref<4x8x32xf32, #tpu.memory_space<vmem>>, vector<4x8x32xf32>
    %c0_2 = arith.constant 0 : index
    %c0_3 = arith.constant 0 : index
    %c0_4 = arith.constant 0 : index
    %1 = vector.load %arg2[%c0_2, %c0_3, %c0_4] : memref<1x8x32xf32, #tpu.memory_space<vmem>>, vector<1x8x32xf32>
    %2 = vector.broadcast %1 : vector<1x8x32xf32> to vector<4x8x32xf32>
    %3 = arith.addf %0, %2 : vector<4x8x32xf32>
    %c0_5 = arith.constant 0 : index
    %c0_6 = arith.constant 0 : index
    %c0_7 = arith.constant 0 : index
    %4 = vector.load %arg3[%c0_5, %c0_6, %c0_7] : memref<1x1x32xf32, #tpu.memory_space<vmem>>, vector<1x1x32xf32>
    %c0_8 = arith.constant 0 : index
    %c0_9 = arith.constant 0 : index
    %c0_10 = arith.constant 0 : index
    %5 = vector.load %arg4[%c0_8, %c0_9, %c0_10] : memref<1x1x32xf32, #tpu.memory_space<vmem>>, vector<1x1x32xf32>
    %cst = arith.constant dense<0.000000e+00> : vector<4x8xf32>
    %6 = vector.multi_reduction <add>, %3, %cst [2] : vector<4x8x32xf32> to vector<4x8xf32>
    %7 = vector.shape_cast %6 : vector<4x8xf32> to vector<4x8x1xf32>
    %cst_11 = arith.constant 3.200000e+01 : f32
    %8 = vector.broadcast %cst_11 : f32 to vector<4x8x1xf32>
    %9 = arith.divf %7, %8 : vector<4x8x1xf32>
    %10 = vector.broadcast %9 : vector<4x8x1xf32> to vector<4x8x32xf32>
    %11 = arith.subf %3, %10 : vector<4x8x32xf32>
    %12 = arith.mulf %11, %11 : vector<4x8x32xf32>
    %cst_12 = arith.constant dense<0.000000e+00> : vector<4x8xf32>
    %13 = vector.multi_reduction <add>, %12, %cst_12 [2] : vector<4x8x32xf32> to vector<4x8xf32>
    %14 = vector.shape_cast %13 : vector<4x8xf32> to vector<4x8x1xf32>
    %cst_13 = arith.constant 3.200000e+01 : f32
    %15 = vector.broadcast %cst_13 : f32 to vector<4x8x1xf32>
    %16 = arith.divf %14, %15 : vector<4x8x1xf32>
    %cst_14 = arith.constant 9.99999974E-6 : f32
    %17 = vector.broadcast %cst_14 : f32 to vector<4x8x1xf32>
    %18 = arith.addf %16, %17 : vector<4x8x1xf32>
    %19 = math.rsqrt %18 : vector<4x8x1xf32>
    %20 = vector.broadcast %19 : vector<4x8x1xf32> to vector<4x8x32xf32>
    %21 = arith.mulf %11, %20 : vector<4x8x32xf32>
    %22 = vector.broadcast %4 : vector<1x1x32xf32> to vector<4x8x32xf32>
    %23 = arith.mulf %21, %22 : vector<4x8x32xf32>
    %24 = vector.broadcast %5 : vector<1x1x32xf32> to vector<4x8x32xf32>
    %25 = arith.addf %23, %24 : vector<4x8x32xf32>
    %c0_15 = arith.constant 0 : index
    %c0_16 = arith.constant 0 : index
    %c0_17 = arith.constant 0 : index
    %26 = vector.load %arg5[%c0_15, %c0_16, %c0_17] : memref<4x8x32xf32, #tpu.memory_space<vmem>>, vector<4x8x32xf32>
    tpu.vector_store %arg5[%c0_15, %c0_16, %c0_17], %25 {strides = array<i32>} : memref<4x8x32xf32, #tpu.memory_space<vmem>>, vector<4x8x32xf32>,
    return
  }
  func.func @transform_0(%arg0: i32) -> (i32, i32, i32) {
    %c0_i32 = arith.constant 0 : i32
    %c0_i32_0 = arith.constant 0 : i32
    %c0_i32_1 = arith.constant 0 : i32
    return %arg0, %c0_i32, %c0_i32_0 : i32, i32, i32
  }
  func.func @transform_1(%arg0: i32) -> (i32, i32, i32) {
    %c0_i32 = arith.constant 0 : i32
    %c0_i32_0 = arith.constant 0 : i32
    %c0_i32_1 = arith.constant 0 : i32
    %c0_i32_2 = arith.constant 0 : i32
    return %c0_i32, %c0_i32_0, %c0_i32_1 : i32, i32, i32
  }
  func.func @transform_2(%arg0: i32) -> (i32, i32, i32) {
    %c0_i32 = arith.constant 0 : i32
    %c0_i32_0 = arith.constant 0 : i32
    %c0_i32_1 = arith.constant 0 : i32
    %c0_i32_2 = arith.constant 0 : i32
    return %c0_i32, %c0_i32_0, %c0_i32_1 : i32, i32, i32
  }
  func.func @transform_3(%arg0: i32) -> (i32, i32, i32) {
    %c0_i32 = arith.constant 0 : i32
    %c0_i32_0 = arith.constant 0 : i32
    %c0_i32_1 = arith.constant 0 : i32
    %c0_i32_2 = arith.constant 0 : i32
    return %c0_i32, %c0_i32_0, %c0_i32_1 : i32, i32, i32
  }
  func.func @transform_4(%arg0: i32) -> (i32, i32, i32) {
    %c0_i32 = arith.constant 0 : i32
    %c0_i32_0 = arith.constant 0 : i32
    %c0_i32_1 = arith.constant 0 : i32
    return %arg0, %c0_i32, %c0_i32_0 : i32, i32, i32
  }
}

module attributes {stable_mosaic.version = 11 : i64} {
  func.func @_encode_block_kernel(%arg0: i32, %arg1: memref<1x8x32xf32, #tpu.memory_space<vmem>>, %arg2: memref<4x32x8xbf16, #tpu.memory_space<vmem>>, %arg3: memref<4x1x8xf32, #tpu.memory_space<vmem>>, %arg4: memref<4x8x32xbf16, #tpu.memory_space<vmem>>, %arg5: memref<4x8x1xf32, #tpu.memory_space<vmem>>, %arg6: memref<4x32x8xbf16, #tpu.memory_space<vmem>>, %arg7: memref<4x1x8xf32, #tpu.memory_space<vmem>>, %arg8: memref<4x8x32xbf16, #tpu.memory_space<vmem>>, %arg9: memref<1x32xf32, #tpu.memory_space<vmem>>, %arg10: memref<1x32xf32, #tpu.memory_space<vmem>>, %arg11: memref<1x32xf32, #tpu.memory_space<vmem>>, %arg12: memref<32x32xbf16, #tpu.memory_space<vmem>>, %arg13: memref<1x32xf32, #tpu.memory_space<vmem>>, %arg14: memref<32x32xbf16, #tpu.memory_space<vmem>>, %arg15: memref<1x32xf32, #tpu.memory_space<vmem>>, %arg16: memref<1x32xf32, #tpu.memory_space<vmem>>, %arg17: memref<1x32xf32, #tpu.memory_space<vmem>>, %arg18: memref<1x8x32xf32, #tpu.memory_space<vmem>>) attributes {dimension_semantics = [#tpu.dimension_semantics<parallel>], iteration_bounds = array<i64: 4>, scalar_prefetch = 0 : i64, scratch_operands = 0 : i64, tpu.core_type = #tpu.core_type<tc>, window_params = [{transform_indices = @transform_0, window_bounds = array<i64: 1, 8, 32>}, {pipeline_mode = #tpu.pipeline_mode<synchronous>, transform_indices = @transform_1, window_bounds = array<i64: 4, 32, 8>}, {pipeline_mode = #tpu.pipeline_mode<synchronous>, transform_indices = @transform_2, window_bounds = array<i64: 4, 1, 8>}, {pipeline_mode = #tpu.pipeline_mode<synchronous>, transform_indices = @transform_3, window_bounds = array<i64: 4, 8, 32>}, {pipeline_mode = #tpu.pipeline_mode<synchronous>, transform_indices = @transform_4, window_bounds = array<i64: 4, 8, 1>}, {pipeline_mode = #tpu.pipeline_mode<synchronous>, transform_indices = @transform_5, window_bounds = array<i64: 4, 32, 8>}, {pipeline_mode = #tpu.pipeline_mode<synchronous>, transform_indices = @transform_6, window_bounds = array<i64: 4, 1, 8>}, {pipeline_mode = #tpu.pipeline_mode<synchronous>, transform_indices = @transform_7, window_bounds = array<i64: 4, 8, 32>}, {pipeline_mode = #tpu.pipeline_mode<synchronous>, transform_indices = @transform_8, window_bounds = array<i64: 1, 32>}, {pipeline_mode = #tpu.pipeline_mode<synchronous>, transform_indices = @transform_9, window_bounds = array<i64: 1, 32>}, {pipeline_mode = #tpu.pipeline_mode<synchronous>, transform_indices = @transform_10, window_bounds = array<i64: 1, 32>}, {pipeline_mode = #tpu.pipeline_mode<synchronous>, transform_indices = @transform_11, window_bounds = array<i64: 32, 32>}, {pipeline_mode = #tpu.pipeline_mode<synchronous>, transform_indices = @transform_12, window_bounds = array<i64: 1, 32>}, {pipeline_mode = #tpu.pipeline_mode<synchronous>, transform_indices = @transform_13, window_bounds = array<i64: 32, 32>}, {pipeline_mode = #tpu.pipeline_mode<synchronous>, transform_indices = @transform_14, window_bounds = array<i64: 1, 32>}, {pipeline_mode = #tpu.pipeline_mode<synchronous>, transform_indices = @transform_15, window_bounds = array<i64: 1, 32>}, {pipeline_mode = #tpu.pipeline_mode<synchronous>, transform_indices = @transform_16, window_bounds = array<i64: 1, 32>}, {transform_indices = @transform_17, window_bounds = array<i64: 1, 8, 32>}]} {
    %c0 = arith.constant 0 : index
    %c0_0 = arith.constant 0 : index
    %c0_1 = arith.constant 0 : index
    %0 = vector.load %arg1[%c0, %c0_0, %c0_1] : memref<1x8x32xf32, #tpu.memory_space<vmem>>, vector<1x8x32xf32>
    %1 = vector.shape_cast %0 : vector<1x8x32xf32> to vector<8x32xf32>
    %2 = arith.truncf %1 : vector<8x32xf32> to vector<8x32xbf16>
    %3 = tpu.transpose %1, [1, 0] : vector<8x32xf32> -> vector<32x8xf32>
    %4 = arith.truncf %3 : vector<32x8xf32> to vector<32x8xbf16>
    %c0_2 = arith.constant 0 : index
    %c0_3 = arith.constant 0 : index
    %5 = vector.load %arg9[%c0_2, %c0_3] : memref<1x32xf32, #tpu.memory_space<vmem>>, vector<1x32xf32>
    %c0_4 = arith.constant 0 : index
    %c0_5 = arith.constant 0 : index
    %c0_6 = arith.constant 0 : index
    %6 = vector.load %arg2[%c0_4, %c0_5, %c0_6] : memref<4x32x8xbf16, #tpu.memory_space<vmem>>, vector<1x32x8xbf16>
    %7 = vector.shape_cast %6 : vector<1x32x8xbf16> to vector<32x8xbf16>
    %cst = arith.constant dense<0.000000e+00> : vector<8x8xf32>
    %8 = tpu.matmul %2, %7, %cst {dimension_numbers = #tpu.dot_dimension_numbers<[1], [0], [0], [1], [0, 0, 1, 1], [], []>} : vector<8x32xbf16>, vector<32x8xbf16>, vector<8x8xf32> -> vector<8x8xf32>
    %c0_7 = arith.constant 0 : index
    %c0_8 = arith.constant 0 : index
    %c0_9 = arith.constant 0 : index
    %9 = vector.load %arg3[%c0_7, %c0_8, %c0_9] : memref<4x1x8xf32, #tpu.memory_space<vmem>>, vector<1x1x8xf32>
    %10 = vector.shape_cast %9 : vector<1x1x8xf32> to vector<1x8xf32>
    %11 = vector.broadcast %10 : vector<1x8xf32> to vector<8x8xf32>
    %12 = arith.addf %8, %11 : vector<8x8xf32>
    %c0_10 = arith.constant 0 : index
    %c0_11 = arith.constant 0 : index
    %c0_12 = arith.constant 0 : index
    %13 = vector.load %arg4[%c0_10, %c0_11, %c0_12] : memref<4x8x32xbf16, #tpu.memory_space<vmem>>, vector<1x8x32xbf16>
    %14 = vector.shape_cast %13 : vector<1x8x32xbf16> to vector<8x32xbf16>
    %cst_13 = arith.constant dense<0.000000e+00> : vector<8x8xf32>
    %15 = tpu.matmul %14, %4, %cst_13 {dimension_numbers = #tpu.dot_dimension_numbers<[1], [0], [0], [1], [0, 0, 1, 1], [], []>} : vector<8x32xbf16>, vector<32x8xbf16>, vector<8x8xf32> -> vector<8x8xf32>
    %c0_14 = arith.constant 0 : index
    %c0_15 = arith.constant 0 : index
    %c0_16 = arith.constant 0 : index
    %16 = vector.load %arg5[%c0_14, %c0_15, %c0_16] : memref<4x8x1xf32, #tpu.memory_space<vmem>>, vector<1x8x1xf32>
    %17 = vector.shape_cast %16 : vector<1x8x1xf32> to vector<8x1xf32>
    %18 = vector.broadcast %17 : vector<8x1xf32> to vector<8x8xf32>
    %19 = arith.addf %15, %18 : vector<8x8xf32>
    %c0_17 = arith.constant 0 : index
    %c0_18 = arith.constant 0 : index
    %c0_19 = arith.constant 0 : index
    %20 = vector.load %arg6[%c0_17, %c0_18, %c0_19] : memref<4x32x8xbf16, #tpu.memory_space<vmem>>, vector<1x32x8xbf16>
    %21 = vector.shape_cast %20 : vector<1x32x8xbf16> to vector<32x8xbf16>
    %cst_20 = arith.constant dense<0.000000e+00> : vector<8x8xf32>
    %22 = tpu.matmul %2, %21, %cst_20 {dimension_numbers = #tpu.dot_dimension_numbers<[1], [0], [0], [1], [0, 0, 1, 1], [], []>} : vector<8x32xbf16>, vector<32x8xbf16>, vector<8x8xf32> -> vector<8x8xf32>
    %c0_21 = arith.constant 0 : index
    %c0_22 = arith.constant 0 : index
    %c0_23 = arith.constant 0 : index
    %23 = vector.load %arg7[%c0_21, %c0_22, %c0_23] : memref<4x1x8xf32, #tpu.memory_space<vmem>>, vector<1x1x8xf32>
    %24 = vector.shape_cast %23 : vector<1x1x8xf32> to vector<1x8xf32>
    %25 = vector.broadcast %24 : vector<1x8xf32> to vector<8x8xf32>
    %26 = arith.addf %22, %25 : vector<8x8xf32>
    %27 = arith.truncf %12 : vector<8x8xf32> to vector<8x8xbf16>
    %28 = arith.truncf %19 : vector<8x8xf32> to vector<8x8xbf16>
    %cst_24 = arith.constant dense<0.000000e+00> : vector<8x8xf32>
    %29 = tpu.matmul %27, %28, %cst_24 {dimension_numbers = #tpu.dot_dimension_numbers<[1], [0], [0], [1], [0, 0, 1, 1], [], []>} : vector<8x8xbf16>, vector<8x8xbf16>, vector<8x8xf32> -> vector<8x8xf32>
    %cst_25 = arith.constant 0.353553385 : f32
    %30 = vector.broadcast %cst_25 : f32 to vector<8x8xf32>
    %31 = arith.mulf %29, %30 : vector<8x8xf32>
    %cst_26 = arith.constant dense<0xFF800000> : vector<8xf32>
    %32 = vector.multi_reduction <maximumf>, %31, %cst_26 [1] : vector<8x8xf32> to vector<8xf32>
    %33 = vector.shape_cast %32 : vector<8xf32> to vector<8x1xf32>
    %34 = vector.broadcast %33 : vector<8x1xf32> to vector<8x8xf32>
    %35 = arith.subf %31, %34 : vector<8x8xf32>
    %36 = math.exp %35 : vector<8x8xf32>
    %cst_27 = arith.constant dense<0.000000e+00> : vector<8xf32>
    %37 = vector.multi_reduction <add>, %36, %cst_27 [1] : vector<8x8xf32> to vector<8xf32>
    %38 = vector.shape_cast %37 : vector<8xf32> to vector<8x1xf32>
    %39 = tpu.reciprocal %38 {approx = true} : vector<8x1xf32> -> vector<8x1xf32>
    %40 = vector.broadcast %39 : vector<8x1xf32> to vector<8x8xf32>
    %41 = arith.mulf %36, %40 : vector<8x8xf32>
    %42 = arith.truncf %41 : vector<8x8xf32> to vector<8x8xbf16>
    %43 = arith.truncf %26 : vector<8x8xf32> to vector<8x8xbf16>
    %cst_28 = arith.constant dense<0.000000e+00> : vector<8x8xf32>
    %44 = tpu.matmul %42, %43, %cst_28 {dimension_numbers = #tpu.dot_dimension_numbers<[1], [0], [0], [1], [0, 0, 1, 1], [], []>} : vector<8x8xbf16>, vector<8x8xbf16>, vector<8x8xf32> -> vector<8x8xf32>
    %45 = arith.truncf %44 : vector<8x8xf32> to vector<8x8xbf16>
    %c0_29 = arith.constant 0 : index
    %c0_30 = arith.constant 0 : index
    %c0_31 = arith.constant 0 : index
    %46 = vector.load %arg8[%c0_29, %c0_30, %c0_31] : memref<4x8x32xbf16, #tpu.memory_space<vmem>>, vector<1x8x32xbf16>
    %47 = vector.shape_cast %46 : vector<1x8x32xbf16> to vector<8x32xbf16>
    %cst_32 = arith.constant dense<0.000000e+00> : vector<8x32xf32>
    %48 = tpu.matmul %45, %47, %cst_32 {dimension_numbers = #tpu.dot_dimension_numbers<[1], [0], [0], [1], [0, 0, 1, 1], [], []>} : vector<8x8xbf16>, vector<8x32xbf16>, vector<8x32xf32> -> vector<8x32xf32>
    %49 = vector.broadcast %5 : vector<1x32xf32> to vector<8x32xf32>
    %50 = arith.addf %49, %48 : vector<8x32xf32>
    %c1 = arith.constant 1 : index
    %c0_33 = arith.constant 0 : index
    %c0_34 = arith.constant 0 : index
    %51 = vector.load %arg2[%c1, %c0_33, %c0_34] : memref<4x32x8xbf16, #tpu.memory_space<vmem>>, vector<1x32x8xbf16>
    %52 = vector.shape_cast %51 : vector<1x32x8xbf16> to vector<32x8xbf16>
    %cst_35 = arith.constant dense<0.000000e+00> : vector<8x8xf32>
    %53 = tpu.matmul %2, %52, %cst_35 {dimension_numbers = #tpu.dot_dimension_numbers<[1], [0], [0], [1], [0, 0, 1, 1], [], []>} : vector<8x32xbf16>, vector<32x8xbf16>, vector<8x8xf32> -> vector<8x8xf32>
    %c1_36 = arith.constant 1 : index
    %c0_37 = arith.constant 0 : index
    %c0_38 = arith.constant 0 : index
    %54 = vector.load %arg3[%c1_36, %c0_37, %c0_38] : memref<4x1x8xf32, #tpu.memory_space<vmem>>, vector<1x1x8xf32>
    %55 = vector.shape_cast %54 : vector<1x1x8xf32> to vector<1x8xf32>
    %56 = vector.broadcast %55 : vector<1x8xf32> to vector<8x8xf32>
    %57 = arith.addf %53, %56 : vector<8x8xf32>
    %c1_39 = arith.constant 1 : index
    %c0_40 = arith.constant 0 : index
    %c0_41 = arith.constant 0 : index
    %58 = vector.load %arg4[%c1_39, %c0_40, %c0_41] : memref<4x8x32xbf16, #tpu.memory_space<vmem>>, vector<1x8x32xbf16>
    %59 = vector.shape_cast %58 : vector<1x8x32xbf16> to vector<8x32xbf16>
    %cst_42 = arith.constant dense<0.000000e+00> : vector<8x8xf32>
    %60 = tpu.matmul %59, %4, %cst_42 {dimension_numbers = #tpu.dot_dimension_numbers<[1], [0], [0], [1], [0, 0, 1, 1], [], []>} : vector<8x32xbf16>, vector<32x8xbf16>, vector<8x8xf32> -> vector<8x8xf32>
    %c1_43 = arith.constant 1 : index
    %c0_44 = arith.constant 0 : index
    %c0_45 = arith.constant 0 : index
    %61 = vector.load %arg5[%c1_43, %c0_44, %c0_45] : memref<4x8x1xf32, #tpu.memory_space<vmem>>, vector<1x8x1xf32>
    %62 = vector.shape_cast %61 : vector<1x8x1xf32> to vector<8x1xf32>
    %63 = vector.broadcast %62 : vector<8x1xf32> to vector<8x8xf32>
    %64 = arith.addf %60, %63 : vector<8x8xf32>
    %c1_46 = arith.constant 1 : index
    %c0_47 = arith.constant 0 : index
    %c0_48 = arith.constant 0 : index
    %65 = vector.load %arg6[%c1_46, %c0_47, %c0_48] : memref<4x32x8xbf16, #tpu.memory_space<vmem>>, vector<1x32x8xbf16>
    %66 = vector.shape_cast %65 : vector<1x32x8xbf16> to vector<32x8xbf16>
    %cst_49 = arith.constant dense<0.000000e+00> : vector<8x8xf32>
    %67 = tpu.matmul %2, %66, %cst_49 {dimension_numbers = #tpu.dot_dimension_numbers<[1], [0], [0], [1], [0, 0, 1, 1], [], []>} : vector<8x32xbf16>, vector<32x8xbf16>, vector<8x8xf32> -> vector<8x8xf32>
    %c1_50 = arith.constant 1 : index
    %c0_51 = arith.constant 0 : index
    %c0_52 = arith.constant 0 : index
    %68 = vector.load %arg7[%c1_50, %c0_51, %c0_52] : memref<4x1x8xf32, #tpu.memory_space<vmem>>, vector<1x1x8xf32>
    %69 = vector.shape_cast %68 : vector<1x1x8xf32> to vector<1x8xf32>
    %70 = vector.broadcast %69 : vector<1x8xf32> to vector<8x8xf32>
    %71 = arith.addf %67, %70 : vector<8x8xf32>
    %72 = arith.truncf %57 : vector<8x8xf32> to vector<8x8xbf16>
    %73 = arith.truncf %64 : vector<8x8xf32> to vector<8x8xbf16>
    %cst_53 = arith.constant dense<0.000000e+00> : vector<8x8xf32>
    %74 = tpu.matmul %72, %73, %cst_53 {dimension_numbers = #tpu.dot_dimension_numbers<[1], [0], [0], [1], [0, 0, 1, 1], [], []>} : vector<8x8xbf16>, vector<8x8xbf16>, vector<8x8xf32> -> vector<8x8xf32>
    %cst_54 = arith.constant 0.353553385 : f32
    %75 = vector.broadcast %cst_54 : f32 to vector<8x8xf32>
    %76 = arith.mulf %74, %75 : vector<8x8xf32>
    %cst_55 = arith.constant dense<0xFF800000> : vector<8xf32>
    %77 = vector.multi_reduction <maximumf>, %76, %cst_55 [1] : vector<8x8xf32> to vector<8xf32>
    %78 = vector.shape_cast %77 : vector<8xf32> to vector<8x1xf32>
    %79 = vector.broadcast %78 : vector<8x1xf32> to vector<8x8xf32>
    %80 = arith.subf %76, %79 : vector<8x8xf32>
    %81 = math.exp %80 : vector<8x8xf32>
    %cst_56 = arith.constant dense<0.000000e+00> : vector<8xf32>
    %82 = vector.multi_reduction <add>, %81, %cst_56 [1] : vector<8x8xf32> to vector<8xf32>
    %83 = vector.shape_cast %82 : vector<8xf32> to vector<8x1xf32>
    %84 = tpu.reciprocal %83 {approx = true} : vector<8x1xf32> -> vector<8x1xf32>
    %85 = vector.broadcast %84 : vector<8x1xf32> to vector<8x8xf32>
    %86 = arith.mulf %81, %85 : vector<8x8xf32>
    %87 = arith.truncf %86 : vector<8x8xf32> to vector<8x8xbf16>
    %88 = arith.truncf %71 : vector<8x8xf32> to vector<8x8xbf16>
    %cst_57 = arith.constant dense<0.000000e+00> : vector<8x8xf32>
    %89 = tpu.matmul %87, %88, %cst_57 {dimension_numbers = #tpu.dot_dimension_numbers<[1], [0], [0], [1], [0, 0, 1, 1], [], []>} : vector<8x8xbf16>, vector<8x8xbf16>, vector<8x8xf32> -> vector<8x8xf32>
    %90 = arith.truncf %89 : vector<8x8xf32> to vector<8x8xbf16>
    %c1_58 = arith.constant 1 : index
    %c0_59 = arith.constant 0 : index
    %c0_60 = arith.constant 0 : index
    %91 = vector.load %arg8[%c1_58, %c0_59, %c0_60] : memref<4x8x32xbf16, #tpu.memory_space<vmem>>, vector<1x8x32xbf16>
    %92 = vector.shape_cast %91 : vector<1x8x32xbf16> to vector<8x32xbf16>
    %cst_61 = arith.constant dense<0.000000e+00> : vector<8x32xf32>
    %93 = tpu.matmul %90, %92, %cst_61 {dimension_numbers = #tpu.dot_dimension_numbers<[1], [0], [0], [1], [0, 0, 1, 1], [], []>} : vector<8x8xbf16>, vector<8x32xbf16>, vector<8x32xf32> -> vector<8x32xf32>
    %94 = arith.addf %50, %93 : vector<8x32xf32>
    %c2 = arith.constant 2 : index
    %c0_62 = arith.constant 0 : index
    %c0_63 = arith.constant 0 : index
    %95 = vector.load %arg2[%c2, %c0_62, %c0_63] : memref<4x32x8xbf16, #tpu.memory_space<vmem>>, vector<1x32x8xbf16>
    %96 = vector.shape_cast %95 : vector<1x32x8xbf16> to vector<32x8xbf16>
    %cst_64 = arith.constant dense<0.000000e+00> : vector<8x8xf32>
    %97 = tpu.matmul %2, %96, %cst_64 {dimension_numbers = #tpu.dot_dimension_numbers<[1], [0], [0], [1], [0, 0, 1, 1], [], []>} : vector<8x32xbf16>, vector<32x8xbf16>, vector<8x8xf32> -> vector<8x8xf32>
    %c2_65 = arith.constant 2 : index
    %c0_66 = arith.constant 0 : index
    %c0_67 = arith.constant 0 : index
    %98 = vector.load %arg3[%c2_65, %c0_66, %c0_67] : memref<4x1x8xf32, #tpu.memory_space<vmem>>, vector<1x1x8xf32>
    %99 = vector.shape_cast %98 : vector<1x1x8xf32> to vector<1x8xf32>
    %100 = vector.broadcast %99 : vector<1x8xf32> to vector<8x8xf32>
    %101 = arith.addf %97, %100 : vector<8x8xf32>
    %c2_68 = arith.constant 2 : index
    %c0_69 = arith.constant 0 : index
    %c0_70 = arith.constant 0 : index
    %102 = vector.load %arg4[%c2_68, %c0_69, %c0_70] : memref<4x8x32xbf16, #tpu.memory_space<vmem>>, vector<1x8x32xbf16>
    %103 = vector.shape_cast %102 : vector<1x8x32xbf16> to vector<8x32xbf16>
    %cst_71 = arith.constant dense<0.000000e+00> : vector<8x8xf32>
    %104 = tpu.matmul %103, %4, %cst_71 {dimension_numbers = #tpu.dot_dimension_numbers<[1], [0], [0], [1], [0, 0, 1, 1], [], []>} : vector<8x32xbf16>, vector<32x8xbf16>, vector<8x8xf32> -> vector<8x8xf32>
    %c2_72 = arith.constant 2 : index
    %c0_73 = arith.constant 0 : index
    %c0_74 = arith.constant 0 : index
    %105 = vector.load %arg5[%c2_72, %c0_73, %c0_74] : memref<4x8x1xf32, #tpu.memory_space<vmem>>, vector<1x8x1xf32>
    %106 = vector.shape_cast %105 : vector<1x8x1xf32> to vector<8x1xf32>
    %107 = vector.broadcast %106 : vector<8x1xf32> to vector<8x8xf32>
    %108 = arith.addf %104, %107 : vector<8x8xf32>
    %c2_75 = arith.constant 2 : index
    %c0_76 = arith.constant 0 : index
    %c0_77 = arith.constant 0 : index
    %109 = vector.load %arg6[%c2_75, %c0_76, %c0_77] : memref<4x32x8xbf16, #tpu.memory_space<vmem>>, vector<1x32x8xbf16>
    %110 = vector.shape_cast %109 : vector<1x32x8xbf16> to vector<32x8xbf16>
    %cst_78 = arith.constant dense<0.000000e+00> : vector<8x8xf32>
    %111 = tpu.matmul %2, %110, %cst_78 {dimension_numbers = #tpu.dot_dimension_numbers<[1], [0], [0], [1], [0, 0, 1, 1], [], []>} : vector<8x32xbf16>, vector<32x8xbf16>, vector<8x8xf32> -> vector<8x8xf32>
    %c2_79 = arith.constant 2 : index
    %c0_80 = arith.constant 0 : index
    %c0_81 = arith.constant 0 : index
    %112 = vector.load %arg7[%c2_79, %c0_80, %c0_81] : memref<4x1x8xf32, #tpu.memory_space<vmem>>, vector<1x1x8xf32>
    %113 = vector.shape_cast %112 : vector<1x1x8xf32> to vector<1x8xf32>
    %114 = vector.broadcast %113 : vector<1x8xf32> to vector<8x8xf32>
    %115 = arith.addf %111, %114 : vector<8x8xf32>
    %116 = arith.truncf %101 : vector<8x8xf32> to vector<8x8xbf16>
    %117 = arith.truncf %108 : vector<8x8xf32> to vector<8x8xbf16>
    %cst_82 = arith.constant dense<0.000000e+00> : vector<8x8xf32>
    %118 = tpu.matmul %116, %117, %cst_82 {dimension_numbers = #tpu.dot_dimension_numbers<[1], [0], [0], [1], [0, 0, 1, 1], [], []>} : vector<8x8xbf16>, vector<8x8xbf16>, vector<8x8xf32> -> vector<8x8xf32>
    %cst_83 = arith.constant 0.353553385 : f32
    %119 = vector.broadcast %cst_83 : f32 to vector<8x8xf32>
    %120 = arith.mulf %118, %119 : vector<8x8xf32>
    %cst_84 = arith.constant dense<0xFF800000> : vector<8xf32>
    %121 = vector.multi_reduction <maximumf>, %120, %cst_84 [1] : vector<8x8xf32> to vector<8xf32>
    %122 = vector.shape_cast %121 : vector<8xf32> to vector<8x1xf32>
    %123 = vector.broadcast %122 : vector<8x1xf32> to vector<8x8xf32>
    %124 = arith.subf %120, %123 : vector<8x8xf32>
    %125 = math.exp %124 : vector<8x8xf32>
    %cst_85 = arith.constant dense<0.000000e+00> : vector<8xf32>
    %126 = vector.multi_reduction <add>, %125, %cst_85 [1] : vector<8x8xf32> to vector<8xf32>
    %127 = vector.shape_cast %126 : vector<8xf32> to vector<8x1xf32>
    %128 = tpu.reciprocal %127 {approx = true} : vector<8x1xf32> -> vector<8x1xf32>
    %129 = vector.broadcast %128 : vector<8x1xf32> to vector<8x8xf32>
    %130 = arith.mulf %125, %129 : vector<8x8xf32>
    %131 = arith.truncf %130 : vector<8x8xf32> to vector<8x8xbf16>
    %132 = arith.truncf %115 : vector<8x8xf32> to vector<8x8xbf16>
    %cst_86 = arith.constant dense<0.000000e+00> : vector<8x8xf32>
    %133 = tpu.matmul %131, %132, %cst_86 {dimension_numbers = #tpu.dot_dimension_numbers<[1], [0], [0], [1], [0, 0, 1, 1], [], []>} : vector<8x8xbf16>, vector<8x8xbf16>, vector<8x8xf32> -> vector<8x8xf32>
    %134 = arith.truncf %133 : vector<8x8xf32> to vector<8x8xbf16>
    %c2_87 = arith.constant 2 : index
    %c0_88 = arith.constant 0 : index
    %c0_89 = arith.constant 0 : index
    %135 = vector.load %arg8[%c2_87, %c0_88, %c0_89] : memref<4x8x32xbf16, #tpu.memory_space<vmem>>, vector<1x8x32xbf16>
    %136 = vector.shape_cast %135 : vector<1x8x32xbf16> to vector<8x32xbf16>
    %cst_90 = arith.constant dense<0.000000e+00> : vector<8x32xf32>
    %137 = tpu.matmul %134, %136, %cst_90 {dimension_numbers = #tpu.dot_dimension_numbers<[1], [0], [0], [1], [0, 0, 1, 1], [], []>} : vector<8x8xbf16>, vector<8x32xbf16>, vector<8x32xf32> -> vector<8x32xf32>
    %138 = arith.addf %94, %137 : vector<8x32xf32>
    %c3 = arith.constant 3 : index
    %c0_91 = arith.constant 0 : index
    %c0_92 = arith.constant 0 : index
    %139 = vector.load %arg2[%c3, %c0_91, %c0_92] : memref<4x32x8xbf16, #tpu.memory_space<vmem>>, vector<1x32x8xbf16>
    %140 = vector.shape_cast %139 : vector<1x32x8xbf16> to vector<32x8xbf16>
    %cst_93 = arith.constant dense<0.000000e+00> : vector<8x8xf32>
    %141 = tpu.matmul %2, %140, %cst_93 {dimension_numbers = #tpu.dot_dimension_numbers<[1], [0], [0], [1], [0, 0, 1, 1], [], []>} : vector<8x32xbf16>, vector<32x8xbf16>, vector<8x8xf32> -> vector<8x8xf32>
    %c3_94 = arith.constant 3 : index
    %c0_95 = arith.constant 0 : index
    %c0_96 = arith.constant 0 : index
    %142 = vector.load %arg3[%c3_94, %c0_95, %c0_96] : memref<4x1x8xf32, #tpu.memory_space<vmem>>, vector<1x1x8xf32>
    %143 = vector.shape_cast %142 : vector<1x1x8xf32> to vector<1x8xf32>
    %144 = vector.broadcast %143 : vector<1x8xf32> to vector<8x8xf32>
    %145 = arith.addf %141, %144 : vector<8x8xf32>
    %c3_97 = arith.constant 3 : index
    %c0_98 = arith.constant 0 : index
    %c0_99 = arith.constant 0 : index
    %146 = vector.load %arg4[%c3_97, %c0_98, %c0_99] : memref<4x8x32xbf16, #tpu.memory_space<vmem>>, vector<1x8x32xbf16>
    %147 = vector.shape_cast %146 : vector<1x8x32xbf16> to vector<8x32xbf16>
    %cst_100 = arith.constant dense<0.000000e+00> : vector<8x8xf32>
    %148 = tpu.matmul %147, %4, %cst_100 {dimension_numbers = #tpu.dot_dimension_numbers<[1], [0], [0], [1], [0, 0, 1, 1], [], []>} : vector<8x32xbf16>, vector<32x8xbf16>, vector<8x8xf32> -> vector<8x8xf32>
    %c3_101 = arith.constant 3 : index
    %c0_102 = arith.constant 0 : index
    %c0_103 = arith.constant 0 : index
    %149 = vector.load %arg5[%c3_101, %c0_102, %c0_103] : memref<4x8x1xf32, #tpu.memory_space<vmem>>, vector<1x8x1xf32>
    %150 = vector.shape_cast %149 : vector<1x8x1xf32> to vector<8x1xf32>
    %151 = vector.broadcast %150 : vector<8x1xf32> to vector<8x8xf32>
    %152 = arith.addf %148, %151 : vector<8x8xf32>
    %c3_104 = arith.constant 3 : index
    %c0_105 = arith.constant 0 : index
    %c0_106 = arith.constant 0 : index
    %153 = vector.load %arg6[%c3_104, %c0_105, %c0_106] : memref<4x32x8xbf16, #tpu.memory_space<vmem>>, vector<1x32x8xbf16>
    %154 = vector.shape_cast %153 : vector<1x32x8xbf16> to vector<32x8xbf16>
    %cst_107 = arith.constant dense<0.000000e+00> : vector<8x8xf32>
    %155 = tpu.matmul %2, %154, %cst_107 {dimension_numbers = #tpu.dot_dimension_numbers<[1], [0], [0], [1], [0, 0, 1, 1], [], []>} : vector<8x32xbf16>, vector<32x8xbf16>, vector<8x8xf32> -> vector<8x8xf32>
    %c3_108 = arith.constant 3 : index
    %c0_109 = arith.constant 0 : index
    %c0_110 = arith.constant 0 : index
    %156 = vector.load %arg7[%c3_108, %c0_109, %c0_110] : memref<4x1x8xf32, #tpu.memory_space<vmem>>, vector<1x1x8xf32>
    %157 = vector.shape_cast %156 : vector<1x1x8xf32> to vector<1x8xf32>
    %158 = vector.broadcast %157 : vector<1x8xf32> to vector<8x8xf32>
    %159 = arith.addf %155, %158 : vector<8x8xf32>
    %160 = arith.truncf %145 : vector<8x8xf32> to vector<8x8xbf16>
    %161 = arith.truncf %152 : vector<8x8xf32> to vector<8x8xbf16>
    %cst_111 = arith.constant dense<0.000000e+00> : vector<8x8xf32>
    %162 = tpu.matmul %160, %161, %cst_111 {dimension_numbers = #tpu.dot_dimension_numbers<[1], [0], [0], [1], [0, 0, 1, 1], [], []>} : vector<8x8xbf16>, vector<8x8xbf16>, vector<8x8xf32> -> vector<8x8xf32>
    %cst_112 = arith.constant 0.353553385 : f32
    %163 = vector.broadcast %cst_112 : f32 to vector<8x8xf32>
    %164 = arith.mulf %162, %163 : vector<8x8xf32>
    %cst_113 = arith.constant dense<0xFF800000> : vector<8xf32>
    %165 = vector.multi_reduction <maximumf>, %164, %cst_113 [1] : vector<8x8xf32> to vector<8xf32>
    %166 = vector.shape_cast %165 : vector<8xf32> to vector<8x1xf32>
    %167 = vector.broadcast %166 : vector<8x1xf32> to vector<8x8xf32>
    %168 = arith.subf %164, %167 : vector<8x8xf32>
    %169 = math.exp %168 : vector<8x8xf32>
    %cst_114 = arith.constant dense<0.000000e+00> : vector<8xf32>
    %170 = vector.multi_reduction <add>, %169, %cst_114 [1] : vector<8x8xf32> to vector<8xf32>
    %171 = vector.shape_cast %170 : vector<8xf32> to vector<8x1xf32>
    %172 = tpu.reciprocal %171 {approx = true} : vector<8x1xf32> -> vector<8x1xf32>
    %173 = vector.broadcast %172 : vector<8x1xf32> to vector<8x8xf32>
    %174 = arith.mulf %169, %173 : vector<8x8xf32>
    %175 = arith.truncf %174 : vector<8x8xf32> to vector<8x8xbf16>
    %176 = arith.truncf %159 : vector<8x8xf32> to vector<8x8xbf16>
    %cst_115 = arith.constant dense<0.000000e+00> : vector<8x8xf32>
    %177 = tpu.matmul %175, %176, %cst_115 {dimension_numbers = #tpu.dot_dimension_numbers<[1], [0], [0], [1], [0, 0, 1, 1], [], []>} : vector<8x8xbf16>, vector<8x8xbf16>, vector<8x8xf32> -> vector<8x8xf32>
    %178 = arith.truncf %177 : vector<8x8xf32> to vector<8x8xbf16>
    %c3_116 = arith.constant 3 : index
    %c0_117 = arith.constant 0 : index
    %c0_118 = arith.constant 0 : index
    %179 = vector.load %arg8[%c3_116, %c0_117, %c0_118] : memref<4x8x32xbf16, #tpu.memory_space<vmem>>, vector<1x8x32xbf16>
    %180 = vector.shape_cast %179 : vector<1x8x32xbf16> to vector<8x32xbf16>
    %cst_119 = arith.constant dense<0.000000e+00> : vector<8x32xf32>
    %181 = tpu.matmul %178, %180, %cst_119 {dimension_numbers = #tpu.dot_dimension_numbers<[1], [0], [0], [1], [0, 0, 1, 1], [], []>} : vector<8x8xbf16>, vector<8x32xbf16>, vector<8x32xf32> -> vector<8x32xf32>
    %182 = arith.addf %138, %181 : vector<8x32xf32>
    %183 = arith.addf %1, %182 : vector<8x32xf32>
    %c0_120 = arith.constant 0 : index
    %c0_121 = arith.constant 0 : index
    %184 = vector.load %arg10[%c0_120, %c0_121] : memref<1x32xf32, #tpu.memory_space<vmem>>, vector<1x32xf32>
    %c0_122 = arith.constant 0 : index
    %c0_123 = arith.constant 0 : index
    %185 = vector.load %arg11[%c0_122, %c0_123] : memref<1x32xf32, #tpu.memory_space<vmem>>, vector<1x32xf32>
    %cst_124 = arith.constant dense<0.000000e+00> : vector<8xf32>
    %186 = vector.multi_reduction <add>, %183, %cst_124 [1] : vector<8x32xf32> to vector<8xf32>
    %187 = vector.shape_cast %186 : vector<8xf32> to vector<8x1xf32>
    %cst_125 = arith.constant 3.200000e+01 : f32
    %188 = vector.broadcast %cst_125 : f32 to vector<8x1xf32>
    %189 = arith.divf %187, %188 : vector<8x1xf32>
    %190 = vector.broadcast %189 : vector<8x1xf32> to vector<8x32xf32>
    %191 = arith.subf %183, %190 : vector<8x32xf32>
    %192 = arith.mulf %191, %191 : vector<8x32xf32>
    %cst_126 = arith.constant dense<0.000000e+00> : vector<8xf32>
    %193 = vector.multi_reduction <add>, %192, %cst_126 [1] : vector<8x32xf32> to vector<8xf32>
    %194 = vector.shape_cast %193 : vector<8xf32> to vector<8x1xf32>
    %cst_127 = arith.constant 3.200000e+01 : f32
    %195 = vector.broadcast %cst_127 : f32 to vector<8x1xf32>
    %196 = arith.divf %194, %195 : vector<8x1xf32>
    %cst_128 = arith.constant 9.99999974E-6 : f32
    %197 = vector.broadcast %cst_128 : f32 to vector<8x1xf32>
    %198 = arith.addf %196, %197 : vector<8x1xf32>
    %199 = math.rsqrt %198 : vector<8x1xf32>
    %200 = vector.broadcast %199 : vector<8x1xf32> to vector<8x32xf32>
    %201 = arith.mulf %191, %200 : vector<8x32xf32>
    %202 = vector.broadcast %184 : vector<1x32xf32> to vector<8x32xf32>
    %203 = arith.mulf %201, %202 : vector<8x32xf32>
    %204 = vector.broadcast %185 : vector<1x32xf32> to vector<8x32xf32>
    %205 = arith.addf %203, %204 : vector<8x32xf32>
    %206 = arith.truncf %205 : vector<8x32xf32> to vector<8x32xbf16>
    %c0_129 = arith.constant 0 : index
    %c0_130 = arith.constant 0 : index
    %207 = vector.load %arg12[%c0_129, %c0_130] : memref<32x32xbf16, #tpu.memory_space<vmem>>, vector<32x32xbf16>
    %cst_131 = arith.constant dense<0.000000e+00> : vector<8x32xf32>
    %208 = tpu.matmul %206, %207, %cst_131 {dimension_numbers = #tpu.dot_dimension_numbers<[1], [0], [0], [1], [0, 0, 1, 1], [], []>} : vector<8x32xbf16>, vector<32x32xbf16>, vector<8x32xf32> -> vector<8x32xf32>
    %c0_132 = arith.constant 0 : index
    %c0_133 = arith.constant 0 : index
    %209 = vector.load %arg13[%c0_132, %c0_133] : memref<1x32xf32, #tpu.memory_space<vmem>>, vector<1x32xf32>
    %210 = vector.broadcast %209 : vector<1x32xf32> to vector<8x32xf32>
    %211 = arith.addf %208, %210 : vector<8x32xf32>
    %212 = arith.mulf %211, %211 : vector<8x32xf32>
    %213 = arith.mulf %211, %212 : vector<8x32xf32>
    %cst_134 = arith.constant 4.471500e-02 : f32
    %214 = vector.broadcast %cst_134 : f32 to vector<8x32xf32>
    %215 = arith.mulf %214, %213 : vector<8x32xf32>
    %216 = arith.addf %211, %215 : vector<8x32xf32>
    %cst_135 = arith.constant 0.797884583 : f32
    %217 = vector.broadcast %cst_135 : f32 to vector<8x32xf32>
    %218 = arith.mulf %217, %216 : vector<8x32xf32>
    %219 = math.tanh %218 : vector<8x32xf32>
    %cst_136 = arith.constant 1.000000e+00 : f32
    %220 = vector.broadcast %cst_136 : f32 to vector<8x32xf32>
    %221 = arith.addf %220, %219 : vector<8x32xf32>
    %cst_137 = arith.constant 5.000000e-01 : f32
    %222 = vector.broadcast %cst_137 : f32 to vector<8x32xf32>
    %223 = arith.mulf %222, %221 : vector<8x32xf32>
    %224 = arith.mulf %211, %223 : vector<8x32xf32>
    %225 = arith.truncf %224 : vector<8x32xf32> to vector<8x32xbf16>
    %c0_138 = arith.constant 0 : index
    %c0_139 = arith.constant 0 : index
    %226 = vector.load %arg14[%c0_138, %c0_139] : memref<32x32xbf16, #tpu.memory_space<vmem>>, vector<32x32xbf16>
    %cst_140 = arith.constant dense<0.000000e+00> : vector<8x32xf32>
    %227 = tpu.matmul %225, %226, %cst_140 {dimension_numbers = #tpu.dot_dimension_numbers<[1], [0], [0], [1], [0, 0, 1, 1], [], []>} : vector<8x32xbf16>, vector<32x32xbf16>, vector<8x32xf32> -> vector<8x32xf32>
    %c0_141 = arith.constant 0 : index
    %c0_142 = arith.constant 0 : index
    %228 = vector.load %arg15[%c0_141, %c0_142] : memref<1x32xf32, #tpu.memory_space<vmem>>, vector<1x32xf32>
    %229 = vector.broadcast %228 : vector<1x32xf32> to vector<8x32xf32>
    %230 = arith.addf %227, %229 : vector<8x32xf32>
    %231 = arith.addf %205, %230 : vector<8x32xf32>
    %c0_143 = arith.constant 0 : index
    %c0_144 = arith.constant 0 : index
    %232 = vector.load %arg16[%c0_143, %c0_144] : memref<1x32xf32, #tpu.memory_space<vmem>>, vector<1x32xf32>
    %c0_145 = arith.constant 0 : index
    %c0_146 = arith.constant 0 : index
    %233 = vector.load %arg17[%c0_145, %c0_146] : memref<1x32xf32, #tpu.memory_space<vmem>>, vector<1x32xf32>
    %cst_147 = arith.constant dense<0.000000e+00> : vector<8xf32>
    %234 = vector.multi_reduction <add>, %231, %cst_147 [1] : vector<8x32xf32> to vector<8xf32>
    %235 = vector.shape_cast %234 : vector<8xf32> to vector<8x1xf32>
    %cst_148 = arith.constant 3.200000e+01 : f32
    %236 = vector.broadcast %cst_148 : f32 to vector<8x1xf32>
    %237 = arith.divf %235, %236 : vector<8x1xf32>
    %238 = vector.broadcast %237 : vector<8x1xf32> to vector<8x32xf32>
    %239 = arith.subf %231, %238 : vector<8x32xf32>
    %240 = arith.mulf %239, %239 : vector<8x32xf32>
    %cst_149 = arith.constant dense<0.000000e+00> : vector<8xf32>
    %241 = vector.multi_reduction <add>, %240, %cst_149 [1] : vector<8x32xf32> to vector<8xf32>
    %242 = vector.shape_cast %241 : vector<8xf32> to vector<8x1xf32>
    %cst_150 = arith.constant 3.200000e+01 : f32
    %243 = vector.broadcast %cst_150 : f32 to vector<8x1xf32>
    %244 = arith.divf %242, %243 : vector<8x1xf32>
    %cst_151 = arith.constant 9.99999974E-6 : f32
    %245 = vector.broadcast %cst_151 : f32 to vector<8x1xf32>
    %246 = arith.addf %244, %245 : vector<8x1xf32>
    %247 = math.rsqrt %246 : vector<8x1xf32>
    %248 = vector.broadcast %247 : vector<8x1xf32> to vector<8x32xf32>
    %249 = arith.mulf %239, %248 : vector<8x32xf32>
    %250 = vector.broadcast %232 : vector<1x32xf32> to vector<8x32xf32>
    %251 = arith.mulf %249, %250 : vector<8x32xf32>
    %252 = vector.broadcast %233 : vector<1x32xf32> to vector<8x32xf32>
    %253 = arith.addf %251, %252 : vector<8x32xf32>
    %c0_152 = arith.constant 0 : index
    %c0_153 = arith.constant 0 : index
    %c0_154 = arith.constant 0 : index
    %254 = vector.load %arg18[%c0_152, %c0_153, %c0_154] : memref<1x8x32xf32, #tpu.memory_space<vmem>>, vector<1x8x32xf32>
    %255 = vector.shape_cast %254 : vector<1x8x32xf32> to vector<8x32xf32>
    %256 = vector.shape_cast %253 : vector<8x32xf32> to vector<1x8x32xf32>
    tpu.vector_store %arg18[%c0_152, %c0_153, %c0_154], %256 {strides = array<i32>} : memref<1x8x32xf32, #tpu.memory_space<vmem>>, vector<1x8x32xf32>,
    return
  }
  func.func @transform_0(%arg0: i32) -> (i32, i32, i32) {
    %c0_i32 = arith.constant 0 : i32
    %c0_i32_0 = arith.constant 0 : i32
    %c0_i32_1 = arith.constant 0 : i32
    return %arg0, %c0_i32, %c0_i32_0 : i32, i32, i32
  }
  func.func @transform_1(%arg0: i32) -> (i32, i32, i32) {
    %c0_i32 = arith.constant 0 : i32
    %c0_i32_0 = arith.constant 0 : i32
    %c0_i32_1 = arith.constant 0 : i32
    %c0_i32_2 = arith.constant 0 : i32
    return %c0_i32, %c0_i32_0, %c0_i32_1 : i32, i32, i32
  }
  func.func @transform_2(%arg0: i32) -> (i32, i32, i32) {
    %c0_i32 = arith.constant 0 : i32
    %c0_i32_0 = arith.constant 0 : i32
    %c0_i32_1 = arith.constant 0 : i32
    %c0_i32_2 = arith.constant 0 : i32
    return %c0_i32, %c0_i32_0, %c0_i32_1 : i32, i32, i32
  }
  func.func @transform_3(%arg0: i32) -> (i32, i32, i32) {
    %c0_i32 = arith.constant 0 : i32
    %c0_i32_0 = arith.constant 0 : i32
    %c0_i32_1 = arith.constant 0 : i32
    %c0_i32_2 = arith.constant 0 : i32
    return %c0_i32, %c0_i32_0, %c0_i32_1 : i32, i32, i32
  }
  func.func @transform_4(%arg0: i32) -> (i32, i32, i32) {
    %c0_i32 = arith.constant 0 : i32
    %c0_i32_0 = arith.constant 0 : i32
    %c0_i32_1 = arith.constant 0 : i32
    %c0_i32_2 = arith.constant 0 : i32
    return %c0_i32, %c0_i32_0, %c0_i32_1 : i32, i32, i32
  }
  func.func @transform_5(%arg0: i32) -> (i32, i32, i32) {
    %c0_i32 = arith.constant 0 : i32
    %c0_i32_0 = arith.constant 0 : i32
    %c0_i32_1 = arith.constant 0 : i32
    %c0_i32_2 = arith.constant 0 : i32
    return %c0_i32, %c0_i32_0, %c0_i32_1 : i32, i32, i32
  }
  func.func @transform_6(%arg0: i32) -> (i32, i32, i32) {
    %c0_i32 = arith.constant 0 : i32
    %c0_i32_0 = arith.constant 0 : i32
    %c0_i32_1 = arith.constant 0 : i32
    %c0_i32_2 = arith.constant 0 : i32
    return %c0_i32, %c0_i32_0, %c0_i32_1 : i32, i32, i32
  }
  func.func @transform_7(%arg0: i32) -> (i32, i32, i32) {
    %c0_i32 = arith.constant 0 : i32
    %c0_i32_0 = arith.constant 0 : i32
    %c0_i32_1 = arith.constant 0 : i32
    %c0_i32_2 = arith.constant 0 : i32
    return %c0_i32, %c0_i32_0, %c0_i32_1 : i32, i32, i32
  }
  func.func @transform_8(%arg0: i32) -> (i32, i32) {
    %c0_i32 = arith.constant 0 : i32
    %c0_i32_0 = arith.constant 0 : i32
    %c0_i32_1 = arith.constant 0 : i32
    return %c0_i32, %c0_i32_0 : i32, i32
  }
  func.func @transform_9(%arg0: i32) -> (i32, i32) {
    %c0_i32 = arith.constant 0 : i32
    %c0_i32_0 = arith.constant 0 : i32
    %c0_i32_1 = arith.constant 0 : i32
    return %c0_i32, %c0_i32_0 : i32, i32
  }
  func.func @transform_10(%arg0: i32) -> (i32, i32) {
    %c0_i32 = arith.constant 0 : i32
    %c0_i32_0 = arith.constant 0 : i32
    %c0_i32_1 = arith.constant 0 : i32
    return %c0_i32, %c0_i32_0 : i32, i32
  }
  func.func @transform_11(%arg0: i32) -> (i32, i32) {
    %c0_i32 = arith.constant 0 : i32
    %c0_i32_0 = arith.constant 0 : i32
    %c0_i32_1 = arith.constant 0 : i32
    return %c0_i32, %c0_i32_0 : i32, i32
  }
  func.func @transform_12(%arg0: i32) -> (i32, i32) {
    %c0_i32 = arith.constant 0 : i32
    %c0_i32_0 = arith.constant 0 : i32
    %c0_i32_1 = arith.constant 0 : i32
    return %c0_i32, %c0_i32_0 : i32, i32
  }
  func.func @transform_13(%arg0: i32) -> (i32, i32) {
    %c0_i32 = arith.constant 0 : i32
    %c0_i32_0 = arith.constant 0 : i32
    %c0_i32_1 = arith.constant 0 : i32
    return %c0_i32, %c0_i32_0 : i32, i32
  }
  func.func @transform_14(%arg0: i32) -> (i32, i32) {
    %c0_i32 = arith.constant 0 : i32
    %c0_i32_0 = arith.constant 0 : i32
    %c0_i32_1 = arith.constant 0 : i32
    return %c0_i32, %c0_i32_0 : i32, i32
  }
  func.func @transform_15(%arg0: i32) -> (i32, i32) {
    %c0_i32 = arith.constant 0 : i32
    %c0_i32_0 = arith.constant 0 : i32
    %c0_i32_1 = arith.constant 0 : i32
    return %c0_i32, %c0_i32_0 : i32, i32
  }
  func.func @transform_16(%arg0: i32) -> (i32, i32) {
    %c0_i32 = arith.constant 0 : i32
    %c0_i32_0 = arith.constant 0 : i32
    %c0_i32_1 = arith.constant 0 : i32
    return %c0_i32, %c0_i32_0 : i32, i32
  }
  func.func @transform_17(%arg0: i32) -> (i32, i32, i32) {
    %c0_i32 = arith.constant 0 : i32
    %c0_i32_0 = arith.constant 0 : i32
    %c0_i32_1 = arith.constant 0 : i32
    return %arg0, %c0_i32, %c0_i32_0 : i32, i32, i32
  }
}

</mosaic_0001>

<bundles_post_ra>
// kernel: trans_encoder_forward.3
= control target key start
LH: loop header
LB: loop body
LE: loop exit
PB: predicated region body
PF: predicated region fallthrough
CT: control target
= control target key end

     0   :  { %vm28_vm0 = vcmask 261120   ;;  %s190_s0 = inlined_call_operand.vmem [shape: f32[4,8,32], index: 0, kind: input, shape index: {}]   ;;  %s191_s1 = inlined_call_operand.vmem [shape: f32[1,8,32], index: 1, kind: input, shape index: {}]   ;;  %s192_s2 = inlined_call_operand.vmem [shape: f32[1,1,32], index: 2, kind: input, shape index: {}]   ;;  %s193_s3 = inlined_call_operand.vmem [shape: f32[1,1,32], index: 3, kind: input, shape index: {}]   ;;  %s194_s4 = inlined_call_operand.vmem [shape: f32[4,8,32], index: 4, kind: output, shape index: {}]  }
   0x1   :  { %v17_v0 = vld [vmem:[%s190_s0] sm:$0xff]  ;;  %v19_v2 = vld [vmem:[%s190_s0 + $0x10] sm:$0xff]  ;;  %v18_v5 = vld [vmem:[%s190_s0 + $0x8] sm:$0xff] }
   0x2   :  { %v21_v1 = vld [vmem:[%s191_s1] sm:$0xff]  ;;  %v20_v6 = vld [vmem:[%s190_s0 + $0x18] sm:$0xff] }
   0x3   :  { %v22_v3 = vadd.f32 %v21_v1, %v17_v0  ;;  %v24_v4 = vadd.f32 %v21_v1, %v19_v2  ;;  %v23_v7 = vadd.f32 %v21_v1, %v18_v5  ;;  %v25_v8 = vadd.f32 %v21_v1, %v20_v6  ;;  %v110_v46 = vld [vmem:[%s192_s2] ss:$0 sm:$0xff] }
   0x4   :  { %v111_v48 = vld [vmem:[%s193_s3] ss:$0 sm:$0xff] }
   0x5   :  { %v29_v9 = vsel %vm28_vm0, %v22_v3, 0.0  ;;  %v35_v10 = vsel %vm28_vm0, %v24_v4, 0.0  ;;  %v32_v11 = vsel %vm28_vm0, %v23_v7, 0.0  ;;  %v38_v12 = vsel %vm28_vm0, %v25_v8, 0.0 }
   0x6   :  { %30 = vadd.xlane.f32.xlu0 %v29_v9  ;;  %36 = vadd.xlane.f32.xlu1 %v35_v10 }
   0xa   :  { %33 = vadd.xlane.f32.xlu0 %v32_v11  ;;  %39 = vadd.xlane.f32.xlu1 %v38_v12 }
  0x8f   :  { %v31_v13 = vpop.xlane.xlu0 %30  ;;  %v37_v14 = vpop.xlane.xlu1 %36 }
  0x90   :  { %v42_v15 = vmul.f32 0.03125, %v31_v13  ;;  %v44_v16 = vmul.f32 0.03125, %v37_v14 }
  0x92   :  { %v46_v17 = vsub.f32 %v22_v3, %v42_v15  ;;  %v48_v18 = vsub.f32 %v24_v4, %v44_v16 }
  0x93   :  { %v34_v19 = vpop.xlane.xlu0 %33  ;;  %v40_v20 = vpop.xlane.xlu1 %39 }
  0x94   :  { %v43_v21 = vmul.f32 0.03125, %v34_v19  ;;  %v45_v22 = vmul.f32 0.03125, %v40_v20  ;;  %v50_v23 = vmul.f32 %v46_v17, %v46_v17  ;;  %v52_v24 = vmul.f32 %v48_v18, %v48_v18 }
  0x96   :  { %v47_v25 = vsub.f32 %v23_v7, %v43_v21  ;;  %v49_v26 = vsub.f32 %v25_v8, %v45_v22  ;;  %v54_v27 = vsel %vm28_vm0, %v50_v23, 0.0  ;;  %v60_v28 = vsel %vm28_vm0, %v52_v24, 0.0 }
  0x97   :  { %55 = vadd.xlane.f32.xlu0 %v54_v27 }
  0x98   :  { %v51_v29 = vmul.f32 %v47_v25, %v47_v25  ;;  %v53_v30 = vmul.f32 %v49_v26, %v49_v26 }
  0x9a   :  { %v57_v31 = vsel %vm28_vm0, %v51_v29, 0.0  ;;  %v63_v32 = vsel %vm28_vm0, %v53_v30, 0.0 }
  0x9b   :  { %61 = vadd.xlane.f32.xlu0 %v60_v28  ;;  %58 = vadd.xlane.f32.xlu1 %v57_v31 }
  0x9f   :  { %64 = vadd.xlane.f32.xlu1 %v63_v32 }
 0x120   :  { %v56_v33 = vpop.xlane.xlu0 %55 }
 0x121   :  { %v66_v34 = vmul.f32 0.03125, %v56_v33 }
 0x123   :  { %v70_v35 = vadd.f32 1e-05, %v66_v34 }
 0x124   :  { %v59_v36 = vpop.xlane.xlu1 %58  ;;  %v62_v37 = vpop.xlane.xlu0 %61 }
 0x125   :  { %112 = vrsqrt.f32 %v70_v35  ;;  %v67_v38 = vmul.f32 0.03125, %v59_v36  ;;  %v68_v39 = vmul.f32 0.03125, %v62_v37 }
 0x127   :  { %v71_v40 = vadd.f32 1e-05, %v67_v38  ;;  %v72_v41 = vadd.f32 1e-05, %v68_v39 }
 0x128   :  { %v65_v42 = vpop.xlane.xlu1 %64 }
 0x129   :  { %114 = vrsqrt.f32 %v71_v40  ;;  %v69_v43 = vmul.f32 0.03125, %v65_v42 }
 0x12a   :  { %116 = vrsqrt.f32 %v72_v41 }
 0x12b   :  { %v73_v44 = vadd.f32 1e-05, %v69_v43 }
 0x12d   :  { %118 = vrsqrt.f32 %v73_v44 }
 0x132   :  { %v113_v45 = vpop.eup %112 }
 0x133   :  { %v78_v47 = vmul.f32 %v113_v45, %v46_v17 }
 0x135   :  { %v88_v49 = vmul.f32 %v110_v46, %v78_v47 }
 0x136   :  { %v115_v50 = vpop.eup %114 }
 0x137   :  { %v117_v51 = vpop.eup %116  ;;  %v98_v52 = vadd.f32 %v111_v48, %v88_v49  ;;  %v79_v53 = vmul.f32 %v115_v50, %v47_v25 }
 0x138   :  { %v80_v54 = vmul.f32 %v117_v51, %v48_v18 }
 0x139   :  { %102 = vst.msk [vmem:[%s194_s4] sm:$0xff] %vm28_vm0, %v98_v52  ;;  %v89_v55 = vmul.f32 %v110_v46, %v79_v53 }
 0x13a   :  { %v119_v56 = vpop.eup %118  ;;  %v90_v57 = vmul.f32 %v110_v46, %v80_v54 }
 0x13b   :  { %v99_v58 = vadd.f32 %v111_v48, %v89_v55  ;;  %v81_v59 = vmul.f32 %v119_v56, %v49_v26 }
 0x13c   :  { %v100_v60 = vadd.f32 %v111_v48, %v90_v57 }
 0x13d   :  { %103 = vst.msk [vmem:[%s194_s4 + $0x8] sm:$0xff] %vm28_vm0, %v99_v58  ;;  %v91_v61 = vmul.f32 %v110_v46, %v81_v59 }
 0x13e   :  { %104 = vst.msk [vmem:[%s194_s4 + $0x10] sm:$0xff] %vm28_vm0, %v100_v60 }
 0x13f   :  { %v101_v62 = vadd.f32 %v111_v48, %v91_v61 }
 0x141   :  { %105 = vst.msk [vmem:[%s194_s4 + $0x18] sm:$0xff] %vm28_vm0, %v101_v62 }

// kernel: trans_encoder_forward.4
= control target key start
LH: loop header
LB: loop body
LE: loop exit
PB: predicated region body
PF: predicated region fallthrough
CT: control target
= control target key end

     0   :  { %s2720_s24 = smov 0   ;;  %s3065_s0 = inlined_call_operand.vmem [shape: f32[4,8,32], index: 0, kind: input, shape index: {}, may-alias: {0,17}]   ;;  %s3066_s1 = inlined_call_operand.vmem [shape: bf16[4,32,8], index: 1, kind: input, shape index: {}]   ;;  %s3067_s2 = inlined_call_operand.vmem [shape: f32[4,1,8], index: 2, kind: input, shape index: {}]   ;;  %s3068_s3 = inlined_call_operand.vmem [shape: bf16[4,8,32], index: 3, kind: input, shape index: {}]   ;;  %s3069_s4 = inlined_call_operand.vmem [shape: f32[4,8,1], index: 4, kind: input, shape index: {}]   ;;  %s3070_s5 = inlined_call_operand.vmem [shape: bf16[4,32,8], index: 5, kind: input, shape index: {}]   ;;  %s3071_s6 = inlined_call_operand.vmem [shape: f32[4,1,8], index: 6, kind: input, shape index: {}]   ;;  %s3072_s7 = inlined_call_operand.vmem [shape: bf16[4,8,32], index: 7, kind: input, shape index: {}]   ;;  %s3073_s8 = inlined_call_operand.vmem [shape: f32[1,32], index: 8, kind: input, shape index: {}]   ;;  %s3074_s9 = inlined_call_operand.vmem [shape: f32[1,32], index: 9, kind: input, shape index: {}]   ;;  %s3075_s10 = inlined_call_operand.vmem [shape: f32[1,32], index: 10, kind: input, shape index: {}]   ;;  %s3076_s11 = inlined_call_operand.vmem [shape: bf16[32,32], index: 11, kind: input, shape index: {}]   ;;  %s3077_s12 = inlined_call_operand.vmem [shape: f32[1,32], index: 12, kind: input, shape index: {}]   ;;  %s3078_s13 = inlined_call_operand.vmem [shape: bf16[32,32], index: 13, kind: input, shape index: {}]   ;;  %s3079_s14 = inlined_call_operand.vmem [shape: f32[1,32], index: 14, kind: input, shape index: {}]   ;;  %s3080_s15 = inlined_call_operand.vmem [shape: f32[1,32], index: 15, kind: input, shape index: {}]   ;;  %s3081_s16 = inlined_call_operand.vmem [shape: f32[1,32], index: 16, kind: input, shape index: {}]   ;;  %s3082_s17 = inlined_call_operand.vmem [shape: f32[4,8,32], index: 17, kind: output, shape index: {}, may-alias: {0,17}]  }
   0x1   :  { %3084 = sst [smem:[#allocation2_spill]] %s3065_s0 }
   0x2   :  { %3085 = sst [smem:[#allocation3_spill]] %s3066_s1 }
   0x3 LB: > { %s2205_s25 = sadd.s32 4294967295, %s2625_s24   ;;  %p2209_p0 = scmp.ge.s32.totalorder %s2625_s24, 1  ;;  %s2625_s24 = sphi %s2720_s24, %s27_s24  }
   0x4   : > { %p486_p1 = scmp.lt.s32.totalorder %s2625_s24, 5 }
   0x6   : > { %p487_p2 = pnand %p2209_p0, %p486_p1 }
   0x7   : > { %p536_p3 = scmp.lt.s32.totalorder (!%p487_p2), %s2205_s25, 3  ;;  %s3086_s29 = sld [smem:[#allocation2_spill]] (!%p487_p2) }
   0x8   : > { %490 = sbr.rel (%p487_p2) target bundleno = 5047 (0x13b7), region = 88  ;;  %s3087_s19 = sld [smem:[#allocation3_spill]] (!%p487_p2) }
   0xd   : > { %s3089_s25 = smov (!%p536_p3, %s2205_s25), 3  ;;  %v2627_v1 = vmov 0.0   ;;  %vm2628_vm0 = vmmov 0   ;;  %vm605_vm1 = vcmask 261120   ;;  %v2629_v5 = vmov 0   ;;  %v650_v6 = vld [vmem:[%s3069_s4] sm:$0xff] }
   0xe   : > { %s2210_s26 = sshll.u32 %s3089_s25, 3  ;;  %2380 = vmatprep.subr.bf16.mxu0 %v2627_v1  ;;  %2388 = vmatprep.subr.bf16.mxu1 %v2627_v1  ;;  %v2577_v2 = vld [vmem:[%s3087_s19 + $0x8] sm:$0xff]   ;;  %v2578_v3 = vld [vmem:[%s3087_s19] sm:$0xff]   ;;  %vm768_vm2 = vcmask 1043456   ;;  %vm764_vm3 = vcmask 64512   ;;  %v2581_v56 = vld [vmem:[%s3087_s19 + $0x18] sm:$0xff]  }
   0xf   : > { %s539_s0 = scalar_lea.vmem %s3086_s29, %s2210_s26  ;;  %2381 = vmatpush3.bf16.msra.mxu0 %v2577_v2  ;;  %2384 = vmatprep.mubr.msk.bf16.mxu0 %vm2628_vm0, %v2627_v1  ;;  %v649_v13 = vld [vmem:[%s3068_s3] sm:$0xf]  ;;  %v2579_v29 = vld [vmem:[%s3070_s5 + $0x8] sm:$0xff]   ;;  %v2582_v57 = vld [vmem:[%s3087_s19 + $0x10] sm:$0xff]   ;;  %s543_s28 = scalar_lea.vmem %s3082_s17, %s2210_s26 }
  0x10   : > { %v2736_v0 = vld [vmem:[%s539_s0] sm:$0xff]  ;;  %2382 = vmatprep.subr.bf16.mxu0 %v2627_v1  ;;  %2392 = vmatprep.mubr.msk.bf16.mxu1 %vm2628_vm0, %v2627_v1  ;;  %v2235_v58 = vld [vmem:[%s3069_s4 + $0x8] sm:$0xff] }
  0x11   : > { %547 = vxpose.xlu0.b32.start.end [1/1] (short) (narrow) %v2736_v0, 32  ;;  %v2750_v4 = vpack.c.bf16 %v2736_v0, %v2736_v0  ;;  %2576 = vset.pattern.permute.xlu1 %v2629_v5  ;;  %v2212_v18 = vld [vmem:[%s3067_s2] ss:$0 sm:$0xff]  ;;  %v2234_v2 = vld [vmem:[%s3068_s3 + $0x4] sm:$0xf] }
  0x12   : > { %v2580_v30 = vld [vmem:[%s3070_s5] sm:$0xff]  }
  0x13   : > { %2383 = vmatpush3.bf16.msra.mxu0 %v2578_v3  ;;  %v2217_v42 = vld [vmem:[%s3071_s6] ss:$0 sm:$0xff] }
  0x14   : > { %2396 = vmatprep.subr.bf16.mxu0 %v2627_v1  ;;  %v873_v50 = vld [vmem:[%s3072_s7] sm:$0xf] }
  0x15   : > { %v878_v51 = vsel %vm768_vm2, %v873_v50, 0 }
  0x16   : > { %2385 = vmatmul.mubr.msk.bf16.vlgmr.msra.gmra.mxu0 %vm605_vm1, %v2750_v4 }
  0x17   : > { %2400 = vmatprep.mubr.msk.bf16.mxu0 %vm2628_vm0, %v2627_v1  ;;  %2397 = vmatpush3.bf16.msra.mxu0 %v2579_v29 }
  0x18   : > { %2398 = vmatprep.subr.bf16.mxu0 %v2627_v1 }
  0x1b   : > { %2399 = vmatpush3.bf16.msra.mxu0 %v2580_v30 }
  0x1c   : > { %2410 = vmatprep.subr.bf16.mxu0 %v2627_v1 }
  0x1e   : > { %2401 = vmatmul.mubr.msk.bf16.vlgmr.msra.gmra.mxu0 %vm605_vm1, %v2750_v4 }
  0x1f   : > { %2412 = vmatprep.mubr.msk.bf16.mxu0 %vm2628_vm0, %v2627_v1 }
  0x3a   : > { %2575 = vset.pattern.permute.xlu0 %v2629_v5 }
  0x46   : > { %653 = vperm.xlu0 %2575, %v650_v6  }
  0x8d   : > { %v563_v7 = vpop.trf.xlu0 }
  0x91   : > { %v564_v8 = vpop.trf.xlu0 }
  0x92   : > { %v2768_v12 = vpack.c.bf16 %v564_v8, %v563_v7 }
  0x95   : > { %v565_v9 = vpop.trf.xlu0 }
  0x99   : > { %v566_v10 = vpop.trf.xlu0 }
  0x9a   : > { %v2764_v11 = vpack.c.bf16 %v566_v10, %v565_v9 }
  0x9c   : > { %2389 = vmatpush3.bf16.msra.mxu1 %v2764_v11 }
  0x9d   : > { %2390 = vmatprep.subr.bf16.mxu1 %v2627_v1 }
  0xa0   : > { %2391 = vmatpush3.bf16.msra.mxu1 %v2768_v12 }
  0xa1   : > { %2404 = vmatprep.subr.bf16.mxu1 %v2627_v1 }
  0xa3   : > { %2393 = vmatmul.mubr.msk.bf16.vlgmr.msra.gmra.mxu1 %vm605_vm1, %v649_v13 }
  0xa4   : > { %2406 = vmatprep.mubr.msk.bf16.mxu1 %vm2628_vm0, %v2627_v1 }
  0xc1   : > { %v654_v19 = vpop.permute.xlu0 %653 }
  0xd6   : > { %v643_v14 = vpop.f32.mrf.mxu0 }
  0xd7   : > { %v644_v21 = vadd.f32 %v2212_v18, %v643_v14  ;;  %v2230_v14 = vld [vmem:[%s3067_s2 + $0x1] ss:$0 sm:$0xff] }
  0xd8   : > { %v2386_v15 = vpop.f32.mrf.mxu0 }
  0xd9   : > { %v762_v26 = vpack.c.bf16 %v644_v21, %v644_v21 }
  0xda   : > { %v646_v16 = vpop.f32.mrf.mxu0 }
  0xdc   : > { %v2387_v17 = vpop.f32.mrf.mxu0 }
  0xde   : > { %v756_v43 = vpop.f32.mrf.mxu0 }
  0xdf   : > { %v757_v44 = vadd.f32 %v2217_v42, %v756_v43 }
  0xe0   : > { %v2402_v45 = vpop.f32.mrf.mxu0 }
  0xe1   : > { %v825_v46 = vpack.c.bf16 %v757_v44, %v757_v44 }
  0xe2   : > { %v759_v47 = vpop.f32.mrf.mxu0 }
  0xe3   : > { %v830_v48 = vsel %vm768_vm2, %v825_v46, 0  ;;  %v2248_v47 = vld [vmem:[%s3072_s7 + $0x4] sm:$0xf] }
  0xe4   : > { %v2403_v49 = vpop.f32.mrf.mxu0  ;;  %2411 = vmatpush3.bf16.msra.mxu0 %v830_v48  ;;  %v1224_v48 = vsel %vm768_vm2, %v2248_v47, 0 }
  0xe5   : > { %2422 = vmatprep.subr.bf16.mxu0 %v2627_v1 }
 0x163   : > { %v693_v20 = vpop.f32.mrf.mxu1 }
 0x164   : > { %v694_v22 = vadd.f32 %v693_v20, %v654_v19 }
 0x165   : > { %v2394_v23 = vpop.f32.mrf.mxu1 }
 0x166   : > { %v763_v24 = vpack.c.bf16 %v694_v22, %v694_v22 }
 0x167   : > { %v696_v25 = vpop.f32.mrf.mxu1 }
 0x168   : > { %v770_v27 = vsel %vm768_vm2, %v763_v24, 0  ;;  %v2583_v25 = vld [vmem:[%s3070_s5 + $0x18] sm:$0xff]  }
 0x169   : > { %v2395_v28 = vpop.f32.mrf.mxu1  ;;  %2405 = vmatpush3.bf16.msra.mxu1 %v770_v27 }
 0x16a   : > { %2416 = vmatprep.subr.bf16.mxu1 %v2627_v1 }
 0x16c   : > { %2407 = vmatmul.mubr.msk.bf16.vlgmr.msra.gmra.mxu1 %vm764_vm3, %v762_v26  ;;  %v2584_v26 = vld [vmem:[%s3070_s5 + $0x10] sm:$0xff]  }
 0x16d   : > { %2418 = vmatprep.mubr.msk.bf16.mxu1 %vm2628_vm0, %v2627_v1  ;;  %2417 = vmatpush3.bf16.msra.mxu1 %v878_v51 }
 0x16e   : > { %2430 = vmatprep.subr.bf16.mxu1 %v2627_v1 }
 0x22c   : > { %v806_v31 = vpop.f32.mrf.mxu1 }
 0x22d   : > { %v812_v32 = vmul.f32 0.35355338, %v806_v31 }
 0x22e   : > { %v2408_v33 = vpop.f32.mrf.mxu1 }
 0x22f   : > { %v813_v34 = vsel %vm764_vm3, %v812_v32, -inf  ;;  %v2260_v33 = vld [vmem:[%s3069_s4 + $0x10] sm:$0xff] }
 0x230   : > { %814 = vmax.xlane.f32.xlu1 %v813_v34  ;;  %v809_v35 = vpop.f32.mrf.mxu1 }
 0x232   : > { %v2409_v36 = vpop.f32.mrf.mxu1 }
 0x2b9   : > { %v815_v37 = vpop.xlane.xlu1 %814 }
 0x2ba   : > { %v816_v38 = vsub.f32 %v812_v32, %v815_v37 }
 0x2bc   : > { %v817_v39 = vmul.f32 1.442695, %v816_v38 }
 0x2be   : > { %2597 = vpow2.f32 %v817_v39  ;;  %v2242_v39 = vld [vmem:[%s3071_s6 + $0x1] ss:$0 sm:$0xff] }
 0x2cb   : > { %v2598_v40 = vpop.eup %2597 }
 0x2cc   : > { %v819_v41 = vsel %vm764_vm3, %v2598_v40, 0.0 }
 0x2cd   : > { %820 = vadd.xlane.f32.xlu1 %v819_v41 }
 0x2de   : > { %998 = vperm.xlu1 %2576, %v2235_v58  }
 0x356   : > { %v821_v52 = vpop.xlane.xlu1 %820 }
 0x357   : > { %2599 = vrcp.f32 %v821_v52 }
 0x35a   : > { %v999_v15 = vpop.permute.xlu1 %998 }
 0x364   : > { %v2600_v53 = vpop.eup %2599 }
 0x365   : > { %v823_v54 = vmul.f32 %v2600_v53, %v2598_v40  ;;  %v2585_v53 = vld [vmem:[%s3087_s19 + $0x28] sm:$0xff]  }
 0x367   : > { %v824_v55 = vpack.c.bf16 %v823_v54, %v823_v54  ;;  %v2586_v54 = vld [vmem:[%s3087_s19 + $0x20] sm:$0xff]  }
 0x369   : > { %2413 = vmatmul.mubr.msk.bf16.vlgmr.msra.gmra.mxu0 %vm764_vm3, %v824_v55 }
 0x36a   : > { %2426 = vmatprep.mubr.msk.bf16.mxu0 %vm2628_vm0, %v2627_v1  ;;  %2423 = vmatpush3.bf16.msra.mxu0 %v2581_v56 }
 0x36b   : > { %2424 = vmatprep.subr.bf16.mxu0 %v2627_v1 }
 0x36e   : > { %2425 = vmatpush3.bf16.msra.mxu0 %v2582_v57 }
 0x36f   : > { %2438 = vmatprep.subr.bf16.mxu0 %v2627_v1 }
 0x371   : > { %2427 = vmatmul.mubr.msk.bf16.vlgmr.msra.gmra.mxu0 %vm605_vm1, %v2750_v4 }
 0x372   : > { %2442 = vmatprep.mubr.msk.bf16.mxu0 %vm2628_vm0, %v2627_v1  ;;  %2439 = vmatpush3.bf16.msra.mxu0 %v2583_v25  ;;  %v2588_v25 = vld [vmem:[%s3070_s5 + $0x20] sm:$0xff]  }
 0x373   : > { %2440 = vmatprep.subr.bf16.mxu0 %v2627_v1 }
 0x376   : > { %2441 = vmatpush3.bf16.msra.mxu0 %v2584_v26 }
 0x377   : > { %2452 = vmatprep.subr.bf16.mxu0 %v2627_v1 }
 0x379   : > { %2443 = vmatmul.mubr.msk.bf16.vlgmr.msra.gmra.mxu0 %vm605_vm1, %v2750_v4 }
 0x37a   : > { %2454 = vmatprep.mubr.msk.bf16.mxu0 %vm2628_vm0, %v2627_v1 }
 0x429   : > { %v866_v59 = vpop.f32.mrf.mxu0 }
 0x42a   : > { %v872_v60 = vpack.c.bf16 %v866_v59, %v866_v59 }
 0x42b   : > { %v2414_v61 = vpop.f32.mrf.mxu0 }
 0x42c   : > { %2419 = vmatmul.mubr.msk.bf16.vlgmr.msra.gmra.mxu1 %vm764_vm3, %v872_v60  ;;  %v2259_v60 = vld [vmem:[%s3068_s3 + $0x8] sm:$0xf] }
 0x42d   : > { %2431 = vmatpush3.bf16.msra.mxu1 %v2764_v11  ;;  %v869_v62 = vpop.f32.mrf.mxu0  ;;  %2434 = vmatprep.mubr.msk.bf16.mxu1 %vm2628_vm0, %v2627_v1 }
 0x42e   : > { %2432 = vmatprep.subr.bf16.mxu1 %v2627_v1 }
 0x42f   : > { %v2415_v63 = vpop.f32.mrf.mxu0 }
 0x431   : > { %2433 = vmatpush3.bf16.msra.mxu1 %v2768_v12  ;;  %v986_v3 = vpop.f32.mrf.mxu0 }
 0x432   : > { %2446 = vmatprep.subr.bf16.mxu1 %v2627_v1  ;;  %v987_v17 = vadd.f32 %v2230_v14, %v986_v3  ;;  %v2224_v3 = vld [vmem:[%s3073_s8] ss:$0 sm:$0xff]  ;;  %v2255_v14 = vld [vmem:[%s3067_s2 + $0x2] ss:$0 sm:$0xff] }
 0x433   : > { %v2428_v5 = vpop.f32.mrf.mxu0 }
 0x434   : > { %2435 = vmatmul.mubr.msk.bf16.vlgmr.msra.gmra.mxu1 %vm605_vm1, %v2234_v2  ;;  %v1109_v22 = vpack.c.bf16 %v987_v17, %v987_v17 }
 0x435   : > { %2448 = vmatprep.mubr.msk.bf16.mxu1 %vm2628_vm0, %v2627_v1  ;;  %v989_v6 = vpop.f32.mrf.mxu0 }
 0x437   : > { %v2429_v7 = vpop.f32.mrf.mxu0 }
 0x439   : > { %v1103_v40 = vpop.f32.mrf.mxu0 }
 0x43a   : > { %v1104_v41 = vadd.f32 %v2242_v39, %v1103_v40 }
 0x43b   : > { %v2444_v42 = vpop.f32.mrf.mxu0 }
 0x43c   : > { %v1170_v43 = vpack.c.bf16 %v1104_v41, %v1104_v41 }
 0x43d   : > { %v1106_v44 = vpop.f32.mrf.mxu0 }
 0x43e   : > { %v1175_v45 = vsel %vm768_vm2, %v1170_v43, 0 }
 0x43f   : > { %v2445_v46 = vpop.f32.mrf.mxu0  ;;  %2453 = vmatpush3.bf16.msra.mxu0 %v1175_v45  ;;  %v2285_v45 = vld [vmem:[%s3069_s4 + $0x18] sm:$0xff] }
 0x440   : > { %2464 = vmatprep.subr.bf16.mxu0 %v2627_v1  ;;  %v2273_v46 = vld [vmem:[%s3072_s7 + $0x8] sm:$0xf] }
 0x441   : > { %v1564_v47 = vsel %vm768_vm2, %v2273_v46, 0 }
 0x4ec   : > { %v2841_v8 = vpop.f32.mrf.mxu1 }
 0x4ed   : > { %v926_v5 = vadd.f32 %v2224_v3, %v2841_v8 }
 0x4ee   : > { %v2420_v9 = vpop.f32.mrf.mxu1 }
 0x4f0   : > { %v917_v10 = vpop.f32.mrf.mxu1 }
 0x4f2   : > { %v2421_v13 = vpop.f32.mrf.mxu1 }
 0x4f4   : > { %v1038_v16 = vpop.f32.mrf.mxu1 }
 0x4f5   : > { %v1039_v18 = vadd.f32 %v1038_v16, %v999_v15 }
 0x4f6   : > { %v2436_v19 = vpop.f32.mrf.mxu1 }
 0x4f7   : > { %v1110_v20 = vpack.c.bf16 %v1039_v18, %v1039_v18 }
 0x4f8   : > { %v1041_v21 = vpop.f32.mrf.mxu1 }
 0x4f9   : > { %v1115_v23 = vsel %vm768_vm2, %v1110_v20, 0 }
 0x4fa   : > { %v2437_v24 = vpop.f32.mrf.mxu1  ;;  %2447 = vmatpush3.bf16.msra.mxu1 %v1115_v23 }
 0x4fb   : > { %2458 = vmatprep.subr.bf16.mxu1 %v2627_v1  ;;  %v2587_v24 = vld [vmem:[%s3070_s5 + $0x28] sm:$0xff]  }
 0x4fd   : > { %2449 = vmatmul.mubr.msk.bf16.vlgmr.msra.gmra.mxu1 %vm764_vm3, %v1109_v22 }
 0x4fe   : > { %2460 = vmatprep.mubr.msk.bf16.mxu1 %vm2628_vm0, %v2627_v1  ;;  %2459 = vmatpush3.bf16.msra.mxu1 %v1224_v48 }
 0x4ff   : > { %2472 = vmatprep.subr.bf16.mxu1 %v2627_v1 }
 0x5bd   : > { %v1151_v27 = vpop.f32.mrf.mxu1 }
 0x5be   : > { %v1157_v28 = vmul.f32 0.35355338, %v1151_v27 }
 0x5bf   : > { %v2450_v29 = vpop.f32.mrf.mxu1 }
 0x5c0   : > { %v1158_v30 = vsel %vm764_vm3, %v1157_v28, -inf }
 0x5c1   : > { %1159 = vmax.xlane.f32.xlu1 %v1158_v30  ;;  %v1154_v31 = vpop.f32.mrf.mxu1 }
 0x5c3   : > { %v2451_v32 = vpop.f32.mrf.mxu1 }
 0x5d2   : > { %1338 = vperm.xlu1 %2576, %v2260_v33  }
 0x64a   : > { %v1160_v34 = vpop.xlane.xlu1 %1159 }
 0x64b   : > { %v1161_v35 = vsub.f32 %v1157_v28, %v1160_v34 }
 0x64d   : > { %v1162_v36 = vmul.f32 1.442695, %v1161_v35 }
 0x64e   : > { %v1339_v15 = vpop.permute.xlu1 %1338 }
 0x64f   : > { %2601 = vpow2.f32 %v1162_v36 }
 0x65c   : > { %v2602_v37 = vpop.eup %2601 }
 0x65d   : > { %v1164_v38 = vsel %vm764_vm3, %v2602_v37, 0.0 }
 0x65e   : > { %1165 = vadd.xlane.f32.xlu0 %v1164_v38 }
 0x6e7   : > { %v1166_v49 = vpop.xlane.xlu0 %1165 }
 0x6e8   : > { %2603 = vrcp.f32 %v1166_v49 }
 0x6f5   : > { %v2604_v50 = vpop.eup %2603 }
 0x6f6   : > { %v1168_v51 = vmul.f32 %v2604_v50, %v2602_v37  ;;  %v2267_v37 = vld [vmem:[%s3071_s6 + $0x2] ss:$0 sm:$0xff] }
 0x6f8   : > { %v1169_v52 = vpack.c.bf16 %v1168_v51, %v1168_v51 }
 0x6fa   : > { %2455 = vmatmul.mubr.msk.bf16.vlgmr.msra.gmra.mxu0 %vm764_vm3, %v1169_v52  ;;  %v2589_v52 = vld [vmem:[%s3087_s19 + $0x38] sm:$0xff]  }
 0x6fb   : > { %2468 = vmatprep.mubr.msk.bf16.mxu0 %vm2628_vm0, %v2627_v1  ;;  %2465 = vmatpush3.bf16.msra.mxu0 %v2585_v53  ;;  %v2590_v53 = vld [vmem:[%s3087_s19 + $0x30] sm:$0xff]  }
 0x6fc   : > { %2466 = vmatprep.subr.bf16.mxu0 %v2627_v1 }
 0x6ff   : > { %2467 = vmatpush3.bf16.msra.mxu0 %v2586_v54 }
 0x700   : > { %2480 = vmatprep.subr.bf16.mxu0 %v2627_v1 }
 0x702   : > { %2469 = vmatmul.mubr.msk.bf16.vlgmr.msra.gmra.mxu0 %vm605_vm1, %v2750_v4 }
 0x703   : > { %2484 = vmatprep.mubr.msk.bf16.mxu0 %vm2628_vm0, %v2627_v1  ;;  %2481 = vmatpush3.bf16.msra.mxu0 %v2587_v24 }
 0x704   : > { %2482 = vmatprep.subr.bf16.mxu0 %v2627_v1 }
 0x707   : > { %2483 = vmatpush3.bf16.msra.mxu0 %v2588_v25 }
 0x708   : > { %2494 = vmatprep.subr.bf16.mxu0 %v2627_v1 }
 0x70a   : > { %2485 = vmatmul.mubr.msk.bf16.vlgmr.msra.gmra.mxu0 %vm605_vm1, %v2750_v4 }
 0x70b   : > { %2496 = vmatprep.mubr.msk.bf16.mxu0 %vm2628_vm0, %v2627_v1 }
 0x7ba   : > { %v1211_v55 = vpop.f32.mrf.mxu0 }
 0x7bb   : > { %v1217_v56 = vpack.c.bf16 %v1211_v55, %v1211_v55 }
 0x7bc   : > { %v2456_v57 = vpop.f32.mrf.mxu0 }
 0x7bd   : > { %2461 = vmatmul.mubr.msk.bf16.vlgmr.msra.gmra.mxu1 %vm764_vm3, %v1217_v56 }
 0x7be   : > { %2473 = vmatpush3.bf16.msra.mxu1 %v2764_v11  ;;  %v1214_v58 = vpop.f32.mrf.mxu0  ;;  %2476 = vmatprep.mubr.msk.bf16.mxu1 %vm2628_vm0, %v2627_v1 }
 0x7bf   : > { %2474 = vmatprep.subr.bf16.mxu1 %v2627_v1 }
 0x7c0   : > { %v2457_v59 = vpop.f32.mrf.mxu0 }
 0x7c1   : > { %v2284_v59 = vld [vmem:[%s3068_s3 + $0xc] sm:$0xf] }
 0x7c2   : > { %2475 = vmatpush3.bf16.msra.mxu1 %v2768_v12  ;;  %v1326_v61 = vpop.f32.mrf.mxu0 }
 0x7c3   : > { %2488 = vmatprep.subr.bf16.mxu1 %v2627_v1  ;;  %v1327_v17 = vadd.f32 %v2255_v14, %v1326_v61 }
 0x7c4   : > { %v2470_v62 = vpop.f32.mrf.mxu0 }
 0x7c5   : > { %2477 = vmatmul.mubr.msk.bf16.vlgmr.msra.gmra.mxu1 %vm605_vm1, %v2259_v60  ;;  %v1449_v22 = vpack.c.bf16 %v1327_v17, %v1327_v17 }
 0x7c6   : > { %2490 = vmatprep.mubr.msk.bf16.mxu1 %vm2628_vm0, %v2627_v1  ;;  %v1329_v63 = vpop.f32.mrf.mxu0 }
 0x7c8   : > { %v2471_v2 = vpop.f32.mrf.mxu0 }
 0x7ca   : > { %v1443_v38 = vpop.f32.mrf.mxu0 }
 0x7cb   : > { %v1444_v39 = vadd.f32 %v2267_v37, %v1443_v38 }
 0x7cc   : > { %v2486_v40 = vpop.f32.mrf.mxu0 }
 0x7cd   : > { %v1510_v41 = vpack.c.bf16 %v1444_v39, %v1444_v39 }
 0x7ce   : > { %v1446_v42 = vpop.f32.mrf.mxu0 }
 0x7cf   : > { %v1515_v43 = vsel %vm768_vm2, %v1510_v41, 0 }
 0x7d0   : > { %v2487_v44 = vpop.f32.mrf.mxu0  ;;  %2495 = vmatpush3.bf16.msra.mxu0 %v1515_v43  ;;  %v2298_v43 = vld [vmem:[%s3072_s7 + $0xc] sm:$0xf] }
 0x7d1   : > { %2506 = vmatprep.subr.bf16.mxu0 %v2627_v1  ;;  %v1904_v44 = vsel %vm768_vm2, %v2298_v43, 0 }
 0x87d   : > { %v1260_v6 = vpop.f32.mrf.mxu1 }
 0x87e   : > { %v2910_v7 = vadd.f32 %v1260_v6, %v926_v5  ;;  %v2280_v6 = vld [vmem:[%s3067_s2 + $0x3] ss:$0 sm:$0xff] }
 0x87f   : > { %v2462_v9 = vpop.f32.mrf.mxu1 }
 0x881   : > { %v1263_v10 = vpop.f32.mrf.mxu1 }
 0x883   : > { %v2463_v13 = vpop.f32.mrf.mxu1 }
 0x885   : > { %v1378_v16 = vpop.f32.mrf.mxu1 }
 0x886   : > { %v1379_v18 = vadd.f32 %v1378_v16, %v1339_v15 }
 0x887   : > { %v2478_v19 = vpop.f32.mrf.mxu1 }
 0x888   : > { %v1450_v20 = vpack.c.bf16 %v1379_v18, %v1379_v18 }
 0x889   : > { %v1381_v21 = vpop.f32.mrf.mxu1 }
 0x88a   : > { %v1455_v8 = vsel %vm768_vm2, %v1450_v20, 0  ;;  %v2592_v21 = vld [vmem:[%s3070_s5 + $0x30] sm:$0xff]  }
 0x88b   : > { %v2479_v23 = vpop.f32.mrf.mxu1  ;;  %2489 = vmatpush3.bf16.msra.mxu1 %v1455_v8 }
 0x88c   : > { %2500 = vmatprep.subr.bf16.mxu1 %v2627_v1 }
 0x88e   : > { %2491 = vmatmul.mubr.msk.bf16.vlgmr.msra.gmra.mxu1 %vm764_vm3, %v1449_v22 }
 0x88f   : > { %2502 = vmatprep.mubr.msk.bf16.mxu1 %vm2628_vm0, %v2627_v1  ;;  %2501 = vmatpush3.bf16.msra.mxu1 %v1564_v47 }
 0x890   : > { %2514 = vmatprep.subr.bf16.mxu1 %v2627_v1 }
 0x94e   : > { %v1491_v26 = vpop.f32.mrf.mxu1 }
 0x94f   : > { %v1497_v27 = vmul.f32 0.35355338, %v1491_v26 }
 0x950   : > { %v2492_v28 = vpop.f32.mrf.mxu1 }
 0x951   : > { %v1498_v29 = vsel %vm764_vm3, %v1497_v27, -inf }
 0x952   : > { %1499 = vmax.xlane.f32.xlu1 %v1498_v29  ;;  %v1494_v30 = vpop.f32.mrf.mxu1 }
 0x954   : > { %v2493_v31 = vpop.f32.mrf.mxu1 }
 0x9db   : > { %v1500_v32 = vpop.xlane.xlu1 %1499 }
 0x9dc   : > { %v1501_v33 = vsub.f32 %v1497_v27, %v1500_v32 }
 0x9de   : > { %v1502_v34 = vmul.f32 1.442695, %v1501_v33 }
 0x9e0   : > { %2605 = vpow2.f32 %v1502_v34 }
 0x9ed   : > { %v2606_v35 = vpop.eup %2605 }
 0x9ee   : > { %v1504_v36 = vsel %vm764_vm3, %v2606_v35, 0.0 }
 0x9ef   : > { %1505 = vadd.xlane.f32.xlu0 %v1504_v36 }
 0xa05   : > { %1678 = vperm.xlu0 %2575, %v2285_v45  }
 0xa78   : > { %v1506_v48 = vpop.xlane.xlu0 %1505 }
 0xa79   : > { %2607 = vrcp.f32 %v1506_v48 }
 0xa80   : > { %v1679_v9 = vpop.permute.xlu0 %1678 }
 0xa86   : > { %v2608_v49 = vpop.eup %2607 }
 0xa87   : > { %v1508_v50 = vmul.f32 %v2608_v49, %v2606_v35 }
 0xa89   : > { %v1509_v51 = vpack.c.bf16 %v1508_v50, %v1508_v50 }
 0xa8b   : > { %2497 = vmatmul.mubr.msk.bf16.vlgmr.msra.gmra.mxu0 %vm764_vm3, %v1509_v51 }
 0xa8c   : > { %2510 = vmatprep.mubr.msk.bf16.mxu0 %vm2628_vm0, %v2627_v1  ;;  %2507 = vmatpush3.bf16.msra.mxu0 %v2589_v52 }
 0xa8d   : > { %2508 = vmatprep.subr.bf16.mxu0 %v2627_v1 }
 0xa90   : > { %2509 = vmatpush3.bf16.msra.mxu0 %v2590_v53 }
 0xa91   : > { %2522 = vmatprep.subr.bf16.mxu0 %v2627_v1 }
 0xa93   : > { %2511 = vmatmul.mubr.msk.bf16.vlgmr.msra.gmra.mxu0 %vm605_vm1, %v2750_v4 }
 0xa94   : > { %2526 = vmatprep.mubr.msk.bf16.mxu0 %vm2628_vm0, %v2627_v1 }
 0xb4b   : > { %v1551_v54 = vpop.f32.mrf.mxu0 }
 0xb4c   : > { %v1557_v55 = vpack.c.bf16 %v1551_v54, %v1551_v54 }
 0xb4d   : > { %v2498_v56 = vpop.f32.mrf.mxu0 }
 0xb4e   : > { %2503 = vmatmul.mubr.msk.bf16.vlgmr.msra.gmra.mxu1 %vm764_vm3, %v1557_v55 }
 0xb4f   : > { %2515 = vmatpush3.bf16.msra.mxu1 %v2764_v11  ;;  %v1554_v57 = vpop.f32.mrf.mxu0  ;;  %2518 = vmatprep.mubr.msk.bf16.mxu1 %vm2628_vm0, %v2627_v1 }
 0xb50   : > { %2516 = vmatprep.subr.bf16.mxu1 %v2627_v1 }
 0xb51   : > { %v2499_v58 = vpop.f32.mrf.mxu0 }
 0xb53   : > { %2517 = vmatpush3.bf16.msra.mxu1 %v2768_v12  ;;  %v1666_v11 = vpop.f32.mrf.mxu0 }
 0xb54   : > { %2530 = vmatprep.subr.bf16.mxu1 %v2627_v1  ;;  %v1667_v14 = vadd.f32 %v2280_v6, %v1666_v11  ;;  %v2301_v6 = vld [vmem:[%s3075_s10] ss:$0 sm:$0xff] }
 0xb55   : > { %v2512_v60 = vpop.f32.mrf.mxu0 }
 0xb56   : > { %2519 = vmatmul.mubr.msk.bf16.vlgmr.msra.gmra.mxu1 %vm605_vm1, %v2284_v59  ;;  %v1789_v19 = vpack.c.bf16 %v1667_v14, %v1667_v14  ;;  %v2595_v14 = vld [vmem:[%s3078_s13 + $0x8] sm:$0xff]  }
 0xb57   : > { %2532 = vmatprep.mubr.msk.bf16.mxu1 %vm2628_vm0, %v2627_v1  ;;  %v1669_v61 = vpop.f32.mrf.mxu0 }
 0xb58   : > { %v2593_v61 = vld [vmem:[%s3076_s11 + $0x8] sm:$0xff]  }
 0xb59   : > { %v2513_v62 = vpop.f32.mrf.mxu0 }
 0xc0e   : > { %v1600_v63 = vpop.f32.mrf.mxu1 }
 0xc0f   : > { %v2976_v2 = vadd.f32 %v1600_v63, %v2910_v7  ;;  %v2591_v7 = vld [vmem:[%s3070_s5 + $0x38] sm:$0xff]  }
 0xc10   : > { %v2504_v12 = vpop.f32.mrf.mxu1  ;;  %2523 = vmatpush3.bf16.msra.mxu0 %v2591_v7 }
 0xc11   : > { %2524 = vmatprep.subr.bf16.mxu0 %v2627_v1 }
 0xc12   : > { %v1603_v3 = vpop.f32.mrf.mxu1 }
 0xc13   : > { %v2300_v3 = vld [vmem:[%s3074_s9] ss:$0 sm:$0xff] }
 0xc14   : > { %v2505_v5 = vpop.f32.mrf.mxu1  ;;  %2525 = vmatpush3.bf16.msra.mxu0 %v2592_v21 }
 0xc15   : > { %2536 = vmatprep.subr.bf16.mxu0 %v2627_v1 }
 0xc16   : > { %v1718_v10 = vpop.f32.mrf.mxu1 }
 0xc17   : > { %v1719_v13 = vadd.f32 %v1718_v10, %v1679_v9  ;;  %2527 = vmatmul.mubr.msk.bf16.vlgmr.msra.gmra.mxu0 %vm605_vm1, %v2750_v4  ;;  %v2292_v4 = vld [vmem:[%s3071_s6 + $0x3] ss:$0 sm:$0xff] }
 0xc18   : > { %v2520_v15 = vpop.f32.mrf.mxu1  ;;  %2538 = vmatprep.mubr.msk.bf16.mxu0 %vm2628_vm0, %v2627_v1 }
 0xc19   : > { %v1790_v16 = vpack.c.bf16 %v1719_v13, %v1719_v13  ;;  %v2596_v15 = vld [vmem:[%s3078_s13] sm:$0xff]  }
 0xc1a   : > { %v1721_v17 = vpop.f32.mrf.mxu1 }
 0xc1b   : > { %v1795_v18 = vsel %vm768_vm2, %v1790_v16, 0  ;;  %v2302_v16 = vld [vmem:[%s3077_s12] ss:$0 sm:$0xff] }
 0xc1c   : > { %v2521_v20 = vpop.f32.mrf.mxu1  ;;  %2531 = vmatpush3.bf16.msra.mxu1 %v1795_v18 }
 0xc1d   : > { %2542 = vmatprep.subr.bf16.mxu1 %v2627_v1 }
 0xc1f   : > { %2533 = vmatmul.mubr.msk.bf16.vlgmr.msra.gmra.mxu1 %vm764_vm3, %v1789_v19 }
 0xc20   : > { %2544 = vmatprep.mubr.msk.bf16.mxu1 %vm2628_vm0, %v2627_v1  ;;  %2543 = vmatpush3.bf16.msra.mxu1 %v1904_v44 }
 0xc21   : > { %2556 = vmatprep.subr.bf16.mxu1 %v2627_v1 }
 0xcd7   : > { %v1783_v32 = vpop.f32.mrf.mxu0 }
 0xcd8   : > { %v1784_v33 = vadd.f32 %v2292_v4, %v1783_v32 }
 0xcd9   : > { %v2528_v34 = vpop.f32.mrf.mxu0 }
 0xcda   : > { %v1850_v35 = vpack.c.bf16 %v1784_v33, %v1784_v33 }
 0xcdb   : > { %v1786_v36 = vpop.f32.mrf.mxu0 }
 0xcdc   : > { %v1855_v37 = vsel %vm768_vm2, %v1850_v35, 0 }
 0xcdd   : > { %v2529_v38 = vpop.f32.mrf.mxu0  ;;  %2537 = vmatpush3.bf16.msra.mxu0 %v1855_v37 }
 0xcde   : > { %2548 = vmatprep.subr.bf16.mxu0 %v2627_v1 }
 0xcdf   : > { %v1831_v22 = vpop.f32.mrf.mxu1 }
 0xce0   : > { %v1837_v8 = vmul.f32 0.35355338, %v1831_v22 }
 0xce1   : > { %v2534_v23 = vpop.f32.mrf.mxu1 }
 0xce2   : > { %v1838_v24 = vsel %vm764_vm3, %v1837_v8, -inf }
 0xce3   : > { %1839 = vmax.xlane.f32.xlu0 %v1838_v24  ;;  %v1834_v25 = vpop.f32.mrf.mxu1 }
 0xce5   : > { %v2535_v26 = vpop.f32.mrf.mxu1 }
 0xd6c   : > { %v1840_v27 = vpop.xlane.xlu0 %1839 }
 0xd6d   : > { %v1841_v28 = vsub.f32 %v1837_v8, %v1840_v27 }
 0xd6f   : > { %v1842_v29 = vmul.f32 1.442695, %v1841_v28 }
 0xd71   : > { %2609 = vpow2.f32 %v1842_v29  ;;  %v2306_v29 = vld [vmem:[%s3079_s14] ss:$0 sm:$0xff] }
 0xd7e   : > { %v2610_v30 = vpop.eup %2609 }
 0xd7f   : > { %v1844_v31 = vsel %vm764_vm3, %v2610_v30, 0.0 }
 0xd80   : > { %1845 = vadd.xlane.f32.xlu1 %v1844_v31 }
 0xe09   : > { %v1846_v39 = vpop.xlane.xlu1 %1845 }
 0xe0a   : > { %2611 = vrcp.f32 %v1846_v39 }
 0xe17   : > { %v2612_v40 = vpop.eup %2611 }
 0xe18   : > { %v1848_v41 = vmul.f32 %v2612_v40, %v2610_v30 }
 0xe1a   : > { %v1849_v42 = vpack.c.bf16 %v1848_v41, %v1848_v41 }
 0xe1c   : > { %2539 = vmatmul.mubr.msk.bf16.vlgmr.msra.gmra.mxu0 %vm764_vm3, %v1849_v42 }
 0xe1d   : > { %2552 = vmatprep.mubr.msk.bf16.mxu0 %vm2628_vm0, %v2627_v1  ;;  %2549 = vmatpush3.bf16.msra.mxu0 %v2593_v61 }
 0xe1e   : > { %2550 = vmatprep.subr.bf16.mxu0 %v2627_v1 }
 0xedc   : > { %v1891_v45 = vpop.f32.mrf.mxu0 }
 0xedd   : > { %v1897_v46 = vpack.c.bf16 %v1891_v45, %v1891_v45  ;;  %v2310_v45 = vld [vmem:[%s3080_s15] ss:$0 sm:$0xff] }
 0xede   : > { %v2540_v47 = vpop.f32.mrf.mxu0 }
 0xedf   : > { %2545 = vmatmul.mubr.msk.bf16.vlgmr.msra.gmra.mxu1 %vm764_vm3, %v1897_v46  ;;  %v2311_v47 = vld [vmem:[%s3081_s16] ss:$0 sm:$0xff] }
 0xee0   : > { %v1894_v48 = vpop.f32.mrf.mxu0  ;;  %2560 = vmatprep.mubr.msk.bf16.mxu1 %vm2628_vm0, %v2627_v1  ;;  %2557 = vmatpush3.bf16.msra.mxu1 %v2595_v14 }
 0xee1   : > { %2558 = vmatprep.subr.bf16.mxu1 %v2627_v1 }
 0xee2   : > { %v2541_v49 = vpop.f32.mrf.mxu0 }
 0xee4   : > { %2559 = vmatpush3.bf16.msra.mxu1 %v2596_v15 }
 0xf9f   : > { %v1940_v50 = vpop.f32.mrf.mxu1 }
 0xfa0   : > { %v1946_v51 = vadd.f32 %v1940_v50, %v2976_v2 }
 0xfa1   : > { %v2546_v52 = vpop.f32.mrf.mxu1 }
 0xfa2   : > { %v1947_v53 = vadd.f32 %v1946_v51, %v2736_v0  ;;  %v2594_v0 = vld [vmem:[%s3076_s11] sm:$0xff]  }
 0xfa3   : > { %v1943_v54 = vpop.f32.mrf.mxu1  ;;  %2551 = vmatpush3.bf16.msra.mxu0 %v2594_v0 }
 0xfa4   : > { %v1950_v55 = vsel %vm605_vm1, %v1947_v53, 0.0 }
 0xfa5   : > { %1951 = vadd.xlane.f32.xlu1 %v1950_v55  ;;  %v2547_v56 = vpop.f32.mrf.mxu1 }
0x102e   : > { %v1952_v57 = vpop.xlane.xlu1 %1951 }
0x102f   : > { %v1954_v58 = vmul.f32 0.03125, %v1952_v57 }
0x1031   : > { %v1955_v59 = vsub.f32 %v1947_v53, %v1954_v58 }
0x1033   : > { %v1956_v11 = vmul.f32 %v1955_v59, %v1955_v59 }
0x1035   : > { %v1957_v60 = vsel %vm605_vm1, %v1956_v11, 0.0 }
0x1036   : > { %1958 = vadd.xlane.f32.xlu1 %v1957_v60 }
0x10bf   : > { %v1959_v62 = vpop.xlane.xlu1 %1958 }
0x10c0   : > { %v1960_v63 = vmul.f32 0.03125, %v1959_v62 }
0x10c2   : > { %v1961_v2 = vadd.f32 1e-05, %v1960_v63 }
0x10c4   : > { %2613 = vrsqrt.f32 %v1961_v2 }
0x10d1   : > { %v2614_v12 = vpop.eup %2613 }
0x10d2   : > { %v1963_v5 = vmul.f32 %v2614_v12, %v1955_v59 }
0x10d4   : > { %v1970_v9 = vmul.f32 %v2300_v3, %v1963_v5 }
0x10d6   : > { %v1977_v10 = vadd.f32 %v2301_v6, %v1970_v9 }
0x10d8   : > { %v1978_v13 = vpack.c.bf16 %v1977_v10, %v1977_v10 }
0x10da   : > { %2553 = vmatmul.mubr.msk.bf16.vlgmr.msra.gmra.mxu0 %vm605_vm1, %v1978_v13 }
0x119a   : > { %v2039_v17 = vpop.f32.mrf.mxu0 }
0x119b   : > { %v2040_v18 = vadd.f32 %v2302_v16, %v2039_v17 }
0x119c   : > { %v2554_v19 = vpop.f32.mrf.mxu0 }
0x119d   : > { %v2045_v20 = vmul.f32 %v2040_v18, %v2040_v18 }
0x119e   : > { %v2042_v7 = vpop.f32.mrf.mxu0 }
0x119f   : > { %v2046_v21 = vmul.f32 %v2045_v20, %v2040_v18 }
0x11a0   : > { %v2555_v22 = vpop.f32.mrf.mxu0 }
0x11a1   : > { %v2047_v8 = vmul.f32 0.044715, %v2046_v21 }
0x11a3   : > { %v2048_v23 = vadd.f32 %v2047_v8, %v2040_v18 }
0x11a5   : > { %v2049_v24 = vmul.f32 0.7978846, %v2048_v23 }
0x11a7   : > { %2615 = vtanh.f32 %v2049_v24 }
0x11b4   : > { %v2616_v1 = vpop.eup %2615 }
0x11b5   : > { %v2051_v25 = vadd.f32 1.0, %v2616_v1 }
0x11b7   : > { %v2052_v26 = vmul.f32 0.5, %v2051_v25 }
0x11b9   : > { %v2053_v27 = vmul.f32 %v2052_v26, %v2040_v18 }
0x11bb   : > { %v2054_v28 = vpack.c.bf16 %v2053_v27, %v2053_v27 }
0x11bd   : > { %2561 = vmatmul.mubr.msk.bf16.vlgmr.msra.gmra.mxu1 %vm605_vm1, %v2054_v28 }
0x127d   : > { %v2115_v30 = vpop.f32.mrf.mxu1 }
0x127e   : > { %v2116_v31 = vadd.f32 %v2306_v29, %v2115_v30 }
0x127f   : > { %v2562_v4 = vpop.f32.mrf.mxu1 }
0x1280   : > { %v2121_v32 = vadd.f32 %v2116_v31, %v1977_v10 }
0x1281   : > { %v2118_v33 = vpop.f32.mrf.mxu1 }
0x1282   : > { %v2124_v34 = vsel %vm605_vm1, %v2121_v32, 0.0 }
0x1283   : > { %2125 = vadd.xlane.f32.xlu1 %v2124_v34  ;;  %v2563_v35 = vpop.f32.mrf.mxu1 }
0x130c   : > { %v2126_v36 = vpop.xlane.xlu1 %2125 }
0x130d   : > { %v2127_v37 = vmul.f32 0.03125, %v2126_v36 }
0x130f   : > { %v2128_v38 = vsub.f32 %v2121_v32, %v2127_v37 }
0x1311   : > { %v2129_v39 = vmul.f32 %v2128_v38, %v2128_v38 }
0x1313   : > { %v2130_v40 = vsel %vm605_vm1, %v2129_v39, 0.0 }
0x1314   : > { %2131 = vadd.xlane.f32.xlu1 %v2130_v40 }
0x139d   : > { %v2132_v41 = vpop.xlane.xlu1 %2131 }
0x139e   : > { %v2133_v42 = vmul.f32 0.03125, %v2132_v41 }
0x13a0   : > { %v2134_v43 = vadd.f32 1e-05, %v2133_v42 }
0x13a2   : > { %2617 = vrsqrt.f32 %v2134_v43 }
0x13af   : > { %v2618_v44 = vpop.eup %2617 }
0x13b0   : > { %v2136_v46 = vmul.f32 %v2618_v44, %v2128_v38 }
0x13b2   : > { %v2143_v48 = vmul.f32 %v2310_v45, %v2136_v46 }
0x13b4   : > { %v2150_v49 = vadd.f32 %v2311_v47, %v2143_v48 }
0x13b6   : > { %2151 = vst.msk [vmem:[%s543_s28] sm:$0xff] %vm605_vm1, %v2150_v49 }
0x13b7 PF: > { %s27_s24 = sadd.s32 1, %s2625_s24  }
0x13b8   : > { %p24_p4 = scmp.ge.s32.totalorder %s27_s24, 6  }
0x13ba   :  { %26 = sbr.rel (!%p24_p4) target bundleno = 3 (0x3), region = 139 }

</bundles_post_ra>
